<compile_context>
chip_gen: v5e
topology: v5e:2x2
jax: 0.10.0
libtpu: 0.0.40
codegen_flags: <defaults>
</compile_context>

<pallas_src>
import math
import functools

import jax
import jax.numpy as jnp
from jax.experimental import pallas as pl
from jax.experimental.pallas import tpu as pltpu


def _round_up(x, m):
    return (x + m - 1) // m * m


def _conv_variance_kernel(patches_ref, w2_ref, bias_ref, eps_ref, o_ref, *, rounding):
    # Square the x-patch tile in-kernel (cheap VPU work, hidden under DMA/MXU).
    xp = patches_ref[...]                                   # [TM, Kp]
    x2 = xp * xp

    # MXU matmul with a non-transposed [K, OC_tile] RHS (sigma^2 pre-squared in wrapper).
    var = jax.lax.dot_general(
        x2, w2_ref[...],
        dimension_numbers=(((1,), (0,)), ((), ())),
        preferred_element_type=jnp.float32,
    )                                                       # [TM, TO]
    lrt_std = jnp.sqrt(var + 1e-16)

    eps = eps_ref[...]
    if rounding:
        eps = jnp.round(eps * rounding) * (1.0 / rounding)  # multiply by const, no divide

    o_ref[...] = bias_ref[...] + eps * lrt_std


def conv_variance(x, sigma, bias=None, *, stride=1, padding=0, dilation=1,
                  rounding=0, eps=None, seed=0, tile_m=256, tile_o=128):
    """x: [N, IC, H, W], sigma: [OC, IC, KH, KW], bias: [1, OC, 1, 1] or None.

    Returns [N, OC, OH, OW] = bias + eps * sqrt(1e-16 + conv2d(x*x, sigma*sigma)).
    If `eps` is None, eps is sampled in the wrapper with jax.random (seeded by `seed`)
    and streamed to the kernel; otherwise the provided eps ([N, OC, OH, OW]) is used.
    """
    n, ic, h, w = x.shape
    oc, ic2, kh, kw = sigma.shape
    assert ic == ic2, "in_channels mismatch"
    oh = (h + 2 * padding - dilation * (kh - 1) - 1) // stride + 1
    ow = (w + 2 * padding - dilation * (kw - 1) - 1) // stride + 1
    m = n * oh * ow
    k = ic * kh * kw

    # ---------- wrapper-side layout plumbing ----------
    # im2col in NHWC with (kh, kw, ic) feature ordering.
    x_nhwc = jnp.transpose(x.astype(jnp.float32), (0, 2, 3, 1))
    xp = jnp.pad(x_nhwc, ((0, 0), (padding, padding), (padding, padding), (0, 0)))
    cols = []
    for dkh in range(kh):
        for dkw in range(kw):
            h0 = dkh * dilation
            w0 = dkw * dilation
            cols.append(xp[:, h0:h0 + stride * (oh - 1) + 1:stride,
                           w0:w0 + stride * (ow - 1) + 1:stride, :])
    patches = jnp.concatenate(cols, axis=-1).reshape(m, k)        # [M, K]

    # Hoisted sigma squaring; laid out [K, OC] (matching (kh, kw, ic) row order).
    sig32 = sigma.astype(jnp.float32)
    w2 = jnp.transpose(sig32 * sig32, (2, 3, 1, 0)).reshape(k, oc)  # [K, OC]

    # Lane/sublane-aligned padding: M -> tile, K -> 8, OC -> 128 (lane-dense output).
    tm = min(tile_m, _round_up(m, 8))
    to = tile_o
    m_pad = _round_up(m, tm)
    k_pad = _round_up(k, 8)
    oc_pad = _round_up(oc, to)

    patches = jnp.pad(patches, ((0, m_pad - m), (0, k_pad - k)))
    w2 = jnp.pad(w2, ((0, k_pad - k), (0, oc_pad - oc)))

    if bias is not None:
        bias2d = jnp.pad(bias.astype(jnp.float32).reshape(1, oc),
                         ((0, 0), (0, oc_pad - oc)))
    else:
        bias2d = jnp.zeros((1, oc_pad), jnp.float32)

    if eps is None:
        eps = jax.random.normal(jax.random.PRNGKey(seed), (n, oc, oh, ow),
                                dtype=jnp.float32)
    eps2d = jnp.transpose(eps.astype(jnp.float32), (0, 2, 3, 1)).reshape(m, oc)
    eps2d = jnp.pad(eps2d, ((0, m_pad - m), (0, oc_pad - oc)))

    n_j = oc_pad // to
    n_i = m_pad // tm
    grid = (n_j, n_i)   # OC tile outer so the [K, TO] weight tile stays VMEM-resident.

    in_specs = [
        pl.BlockSpec((tm, k_pad), lambda j, i: (i, 0)),   # x patches
        pl.BlockSpec((k_pad, to), lambda j, i: (0, j)),   # sigma^2 [K, OC]
        pl.BlockSpec((1, to), lambda j, i: (0, j)),       # bias
        pl.BlockSpec((tm, to), lambda j, i: (i, j)),      # eps
    ]
    inputs = [patches, w2, bias2d, eps2d]
    out_spec = pl.BlockSpec((tm, to), lambda j, i: (i, j))

    cost = pl.CostEstimate(
        flops=2 * m_pad * k_pad * oc_pad + 4 * m_pad * oc_pad,
        transcendentals=m_pad * oc_pad,
        bytes_accessed=4 * (m_pad * k_pad + k_pad * oc_pad + oc_pad
                            + 2 * m_pad * oc_pad),
    )

    kernel = functools.partial(_conv_variance_kernel, rounding=rounding)

    out_flat = pl.pallas_call(
        kernel,
        out_shape=jax.ShapeDtypeStruct((m_pad, oc_pad), jnp.float32),
        grid_spec=pltpu.PrefetchScalarGridSpec(
            num_scalar_prefetch=0,
            grid=grid,
            in_specs=in_specs,
            out_specs=out_spec,
        ),
        compiler_params=pltpu.CompilerParams(
            dimension_semantics=("parallel", "parallel")),
        cost_estimate=cost,
    )(*inputs)

    out = out_flat[:m, :oc].reshape(n, oh, ow, oc)
    return jnp.transpose(out, (0, 3, 1, 2))                  # back to NCHW


if __name__ == "__main__":
    # Small shapes consistent with the module: batch=2, in_channels=4, 16x16 spatial,
    # out_channels=8, 3x3 kernel, stride=1, padding=1.
    N, IC, H, W = 2, 4, 16, 16
    OC, KS = 8, 3
    STRIDE, PAD, DIL = 1, 1, 1
    ROUND = 4

    key = jax.random.PRNGKey(0)
    kx, ksig, kbias, keps = jax.random.split(key, 4)

    x = jax.random.normal(kx, (N, IC, H, W), dtype=jnp.float32)

    # reset_parameters(): uniform(-stdv, stdv) with stdv = 1/sqrt(IC*KH*KW)
    stdv = 1.0 / math.sqrt(IC * KS * KS)
    sigma = jax.random.uniform(ksig, (OC, IC, KS, KS), dtype=jnp.float32,
                               minval=-stdv, maxval=stdv)
    bias = jax.random.uniform(kbias, (1, OC, 1, 1), dtype=jnp.float32,
                              minval=-stdv, maxval=stdv)

    OH = (H + 2 * PAD - DIL * (KS - 1) - 1) // STRIDE + 1
    OW = (W + 2 * PAD - DIL * (KS - 1) - 1) // STRIDE + 1

    # Reference std from a real XLA conv (full f32 precision).
    ref_var = jax.lax.conv_general_dilated(
        x * x, sigma * sigma, window_strides=(STRIDE, STRIDE),
        padding=[(PAD, PAD), (PAD, PAD)], rhs_dilation=(DIL, DIL),
        dimension_numbers=("NCHW", "OIHW", "NCHW"),
        precision=jax.lax.Precision.HIGHEST)
    ref_std = jnp.sqrt(1e-16 + ref_var)

    # --- Run 1: explicit eps (exact check of conv/sqrt/bias/rounding math) ---
    eps = jax.random.normal(keps, (N, OC, OH, OW), dtype=jnp.float32)
    out_det = conv_variance(x, sigma, bias, stride=STRIDE, padding=PAD, dilation=DIL,
                            rounding=ROUND, eps=eps)
    out_det = jax.block_until_ready(out_det)
    eps_r = jnp.round(eps * ROUND) / ROUND
    ref_out = bias + eps_r * ref_std
    assert out_det.shape == (N, OC, OH, OW)
    assert jnp.allclose(out_det, ref_out, atol=1e-5, rtol=1e-4), "mismatch vs conv reference"

    # --- Run 2: sampled-eps path (seed-based eps, no rounding, bias=None branch) ---
    out_rng = conv_variance(x, sigma, None, stride=STRIDE, padding=PAD, dilation=DIL,
                            rounding=0, seed=1234)
    out_rng = jax.block_until_ready(out_rng)
    assert out_rng.shape == (N, OC, OH, OW)
    assert bool(jnp.all(jnp.isfinite(out_rng))), "non-finite output from sampled-eps path"
    # With bias=None, out = eps * ref_std; check eps stats are ~N(0,1).
    implied_eps = out_rng / ref_std
    mu = float(jnp.mean(implied_eps))
    sd = float(jnp.std(implied_eps))
    assert abs(mu) < 0.25 and 0.7 < sd < 1.3, f"eps stats off: mean={mu}, std={sd}"

    print("KERNEL_OK")
</pallas_src>

<mosaic_0001>
module attributes {stable_mosaic.version = 11 : i64} {
  func.func @_conv_variance_kernel(%arg0: i32, %arg1: i32, %arg2: memref<256x40xf32, #tpu.memory_space<vmem>>, %arg3: memref<40x128xf32, #tpu.memory_space<vmem>>, %arg4: memref<1x128xf32, #tpu.memory_space<vmem>>, %arg5: memref<256x128xf32, #tpu.memory_space<vmem>>, %arg6: memref<256x128xf32, #tpu.memory_space<vmem>>) attributes {dimension_semantics = [#tpu.dimension_semantics<parallel>, #tpu.dimension_semantics<parallel>], iteration_bounds = array<i64: 1, 2>, scalar_prefetch = 0 : i64, scratch_operands = 0 : i64, tpu.core_type = #tpu.core_type<tc>, window_params = [{transform_indices = @transform_0, window_bounds = array<i64: 256, 40>}, {transform_indices = @transform_1, window_bounds = array<i64: 40, 128>}, {transform_indices = @transform_2, window_bounds = array<i64: 1, 128>}, {transform_indices = @transform_3, window_bounds = array<i64: 256, 128>}, {transform_indices = @transform_4, window_bounds = array<i64: 256, 128>}]} {
    %c0 = arith.constant 0 : index
    %c0_0 = arith.constant 0 : index
    %0 = vector.load %arg2[%c0, %c0_0] : memref<256x40xf32, #tpu.memory_space<vmem>>, vector<256x40xf32>
    %1 = arith.mulf %0, %0 : vector<256x40xf32>
    %c0_1 = arith.constant 0 : index
    %c0_2 = arith.constant 0 : index
    %2 = vector.load %arg3[%c0_1, %c0_2] : memref<40x128xf32, #tpu.memory_space<vmem>>, vector<40x128xf32>
    %cst = arith.constant dense<0.000000e+00> : vector<256x128xf32>
    %3 = tpu.matmul %1, %2, %cst {dimension_numbers = #tpu.dot_dimension_numbers<[1], [0], [0], [1], [0, 0, 1, 1], [], []>} : vector<256x40xf32>, vector<40x128xf32>, vector<256x128xf32> -> vector<256x128xf32>
    %cst_3 = arith.constant 1.000000e-16 : f32
    %4 = vector.broadcast %cst_3 : f32 to vector<256x128xf32>
    %5 = arith.addf %3, %4 : vector<256x128xf32>
    %6 = math.sqrt %5 : vector<256x128xf32>
    %c0_4 = arith.constant 0 : index
    %c0_5 = arith.constant 0 : index
    %7 = vector.load %arg5[%c0_4, %c0_5] : memref<256x128xf32, #tpu.memory_space<vmem>>, vector<256x128xf32>
    %cst_6 = arith.constant 4.000000e+00 : f32
    %8 = vector.broadcast %cst_6 : f32 to vector<256x128xf32>
    %9 = arith.mulf %7, %8 : vector<256x128xf32>
    %10 = math.roundeven %9 : vector<256x128xf32>
    %cst_7 = arith.constant 2.500000e-01 : f32
    %11 = vector.broadcast %cst_7 : f32 to vector<256x128xf32>
    %12 = arith.mulf %10, %11 : vector<256x128xf32>
    %c0_8 = arith.constant 0 : index
    %c0_9 = arith.constant 0 : index
    %13 = vector.load %arg4[%c0_8, %c0_9] : memref<1x128xf32, #tpu.memory_space<vmem>>, vector<1x128xf32>
    %14 = arith.mulf %12, %6 : vector<256x128xf32>
    %15 = vector.broadcast %13 : vector<1x128xf32> to vector<256x128xf32>
    %16 = arith.addf %15, %14 : vector<256x128xf32>
    %c0_10 = arith.constant 0 : index
    %c0_11 = arith.constant 0 : index
    %17 = vector.load %arg6[%c0_10, %c0_11] : memref<256x128xf32, #tpu.memory_space<vmem>>, vector<256x128xf32>
    tpu.vector_store %arg6[%c0_10, %c0_11], %16 {strides = array<i32>} : memref<256x128xf32, #tpu.memory_space<vmem>>, vector<256x128xf32>,
    return
  }
  func.func @transform_0(%arg0: i32, %arg1: i32) -> (i32, i32) {
    %c0_i32 = arith.constant 0 : i32
    %c0_i32_0 = arith.constant 0 : i32
    return %arg1, %c0_i32 : i32, i32
  }
  func.func @transform_1(%arg0: i32, %arg1: i32) -> (i32, i32) {
    %c0_i32 = arith.constant 0 : i32
    %c0_i32_0 = arith.constant 0 : i32
    return %c0_i32, %arg0 : i32, i32
  }
  func.func @transform_2(%arg0: i32, %arg1: i32) -> (i32, i32) {
    %c0_i32 = arith.constant 0 : i32
    %c0_i32_0 = arith.constant 0 : i32
    return %c0_i32, %arg0 : i32, i32
  }
  func.func @transform_3(%arg0: i32, %arg1: i32) -> (i32, i32) {
    %c0_i32 = arith.constant 0 : i32
    return %arg1, %arg0 : i32, i32
  }
  func.func @transform_4(%arg0: i32, %arg1: i32) -> (i32, i32) {
    %c0_i32 = arith.constant 0 : i32
    return %arg1, %arg0 : i32, i32
  }
}

</mosaic_0001>

<bundles_post_ra>
// kernel: tpu_custom_call.1
= control target key start
LH: loop header
LB: loop body
LE: loop exit
PB: predicated region body
PF: predicated region fallthrough
CT: control target
= control target key end

     0   :  { %9 = vsyncpa [#allocation3], 0  ;;  %s2908_s0 = inlined_call_operand.vmem [shape: f32[512,40], index: 0, kind: input, shape index: {}]   ;;  %s2909_s1 = inlined_call_operand.vmem [shape: f32[40,128], index: 1, kind: input, shape index: {}]   ;;  %s2910_s2 = inlined_call_operand.vmem [shape: f32[1,128], index: 2, kind: input, shape index: {}]   ;;  %s2911_s3 = inlined_call_operand.vmem [shape: f32[512,128], index: 3, kind: input, shape index: {}]   ;;  %s2912_s4 = inlined_call_operand.hbm [shape: f32[512,128], index: 4, kind: output, shape index: {}]  }
   0x1   :  { %11 = vsyncpa [#allocation3 + $0x1], 0  ;;  %s1850_s15 = smov 0   ;;  %s1852_s16 = smov 0  }
   0x2   :  { %s1854_s17 = smov 0   ;;  %s1856_s18 = smov 0  }
   0x3   :  { %s1858_s19 = smov 0   ;;  %s1860_s20 = smov 0  }
   0x4 LB: > { %s1299_s21 = sadd.s32 4294967295, %s1821_s20   ;;  %s1300_s22 = sadd.s32 4294967294, %s1821_s20   ;;  %s1821_s20 = sphi %s1860_s20, %s17_s20   ;;  %s1817_s19 = sphi %s1858_s19, %s2981_s19   ;;  %s1813_s18 = sphi %s1856_s18, %s2980_s18   ;;  %s1809_s17 = sphi %s1854_s17, %s2979_s17   ;;  %s1805_s16 = sphi %s1852_s16, %s2978_s16   ;;  %s1801_s15 = sphi %s1850_s15, %s2977_s15  }
   0x5   : > { %s26_s23 = sadd.s32 1, %s1817_s19  ;;  %s144_s24 = sadd.s32 1, %s1809_s17 }
   0x6   : > { %p27_p0 = scmp.ge.s32.totalorder %s26_s23, 2  ;;  %p154_p1 = scmp.ne.s32.totalorder %s1809_s17, %s1805_s16 }
   0x7   : > { %p155_p2 = scmp.eq.s32.totalorder %s1299_s21, 1  ;;  %p160_p3 = scmp.ne.s32.totalorder %s1805_s16, %s1801_s15 }
   0x8   : > { %s2983_s23 = smov (%p27_p0, %s26_s23), 0  ;;  %p161_p5 = scmp.eq.s32.totalorder %s1300_s22, 1 }
   0x9   : > { %p1890_p4 = por %p155_p2, %p154_p1  ;;  %s139_s26 = ssub.s32 %s1817_s19, %s2983_s23 }
   0xa   : > { %p1305_p6 = scmp.ge.s32.totalorder %s1821_s20, 1  ;;  %p142_p7 = scmp.eq.s32.totalorder %s139_s26, 0 }
   0xb   : > { %p1897_p8 = por %p161_p5, %p160_p3  ;;  %p213_p9 = scmp.lt.s32.totalorder %s1821_s20, 3 }
   0xc   : > { %s1903_s28 = scalar_select %p142_p7, %s1809_s17, %s144_s24  }
   0xd   : > { %p214_p10 = pnand %p1305_p6, %p213_p9 }
   0xe   : > { %s1307_s7 = sshll.u32 (!%p214_p10), %s1813_s18, 5  ;;  %s251_s5 = sand.u32 (!%p214_p10), 1, %s1805_s16  }
   0xf   : > { %217 = sbr.rel (%p214_p10) target bundleno = 358 (0x166), region = 36  ;;  %p255_p11 = scmp.lt.s32.totalorder (!%p214_p10), %s1307_s7, 63 }
  0x10   : > { %s2169_s8 = sshll.u32 (!%p214_p10), %s251_s5, 8 }
  0x11   : > { %s2202_s9 = scalar_lea.vmem (!%p214_p10), [#allocation2], %s2169_s8 }
  0x14   : > { %v345_v0 = vld [vmem:[%s2909_s1 + $0x20] sm:$0xff]  ;;  %v344_v1 = vld [vmem:[%s2909_s1 + $0x18] sm:$0xff]  ;;  %v343_v2 = vld [vmem:[%s2909_s1 + $0x10] sm:$0xff]  ;;  %s2985_s7 = smov (!%p255_p11, %s1307_s7), 63  ;;  %vm346_vm0 = vcmask 326656  }
  0x15   : > { %454 = vmatpush.msra.mxu0 %v345_v0  ;;  %1349 = vmatpush.msra.mxu1 %v345_v0  ;;  %v342_v3 = vld [vmem:[%s2909_s1 + $0x8] sm:$0xff]  ;;  %s1308_s12 = sshll.u32 %s2985_s7, 3  ;;  %v341_v4 = vld [vmem:[%s2909_s1] sm:$0xff]  ;;  %s1763_s7 = scalar_lea.hbm %s2912_s4, 512 }
  0x16   : > { %1350 = vmatpush.msra.mxu2 %v345_v0  ;;  %1351 = vmatpush.msra.mxu3 %v345_v0  ;;  %s1929_s24 = scalar_lea.vmem %s2908_s0, %s1308_s12  ;;  %s2000_s30 = scalar_lea.vmem %s2911_s3, %s1308_s12 }
  0x17   : > { %455 = vmatpush.msra.mxu0 %v344_v1  ;;  %1352 = vmatpush.msra.mxu1 %v344_v1  ;;  %v277_v5 = vld [vmem:[%s1929_s24] sm:$0xff]  ;;  %v278_v13 = vld [vmem:[%s1929_s24 + $0x8] sm:$0xff]  ;;  %v279_v21 = vld [vmem:[%s1929_s24 + $0x10] sm:$0xff]  ;;  %s1348_s12 = sshll.u32 %s1813_s18, 8  ;;  %s1182_s18 = sshll.u32 %s2202_s9, 4  ;;  %s1183_s18 = int_to_ptr.vmem [resolvable:$true] %s1182_s18 }
  0x18   : > { %1353 = vmatpush.msra.mxu2 %v344_v1  ;;  %1354 = vmatpush.msra.mxu3 %v344_v1  ;;  %v285_v6 = vld [vmem:[%s1929_s24 + $0x40] sm:$0xff]  ;;  %v309_v8 = vmul.f32 %v277_v5, %v277_v5  ;;  %v286_v14 = vld [vmem:[%s1929_s24 + $0x48] sm:$0xff]  ;;  %v310_v17 = vmul.f32 %v278_v13, %v278_v13  ;;  %v287_v22 = vld [vmem:[%s1929_s24 + $0x50] sm:$0xff]  ;;  %v311_v25 = vmul.f32 %v279_v21, %v279_v21  ;;  %s1181_s21 = scalar_lea.hbm %s2912_s4, %s1348_s12 }
  0x19   : > { %456 = vmatpush.msra.mxu0 %v343_v2  ;;  %1355 = vmatpush.msra.mxu1 %v343_v2  ;;  %v293_v7 = vld [vmem:[%s1929_s24 + $0x80] sm:$0xff]  ;;  %v317_v9 = vmul.f32 %v285_v6, %v285_v6  ;;  %v294_v15 = vld [vmem:[%s1929_s24 + $0x88] sm:$0xff]  ;;  %v318_v18 = vmul.f32 %v286_v14, %v286_v14  ;;  %v295_v23 = vld [vmem:[%s1929_s24 + $0x90] sm:$0xff]  ;;  %v319_v26 = vmul.f32 %v287_v22, %v287_v22  ;;  %s1184_s22 = sshll.u32 %s1181_s21, 4  ;;  %s1185_s22 = int_to_ptr.hbm [resolvable:$true] %s1184_s22 }
  0x1a   : > { %1356 = vmatpush.msra.mxu2 %v343_v2  ;;  %1357 = vmatpush.msra.mxu3 %v343_v2  ;;  %v325_v10 = vmul.f32 %v293_v7, %v293_v7  ;;  %v301_v11 = vld [vmem:[%s1929_s24 + $0xc0] sm:$0xff]  ;;  %v302_v16 = vld [vmem:[%s1929_s24 + $0xc8] sm:$0xff]  ;;  %v326_v19 = vmul.f32 %v294_v15, %v294_v15  ;;  %v303_v24 = vld [vmem:[%s1929_s24 + $0xd0] sm:$0xff]  ;;  %v327_v27 = vmul.f32 %v295_v23, %v295_v23  ;;  %s1757_s26 = sshra.s32 %s1185_s22, 4  ;;  %s1758_s26 = int_to_ptr.hbm [resolvable:$true] %s1757_s26 }
  0x1b   : > { %457 = vmatpush.msra.mxu0 %v342_v3  ;;  %1358 = vmatpush.msra.mxu1 %v342_v3  ;;  %v333_v12 = vmul.f32 %v301_v11, %v301_v11  ;;  %v334_v20 = vmul.f32 %v302_v16, %v302_v16  ;;  %v335_v28 = vmul.f32 %v303_v24, %v303_v24  ;;  %v280_v29 = vld [vmem:[%s1929_s24 + $0x18] sm:$0xff]  ;;  %v281_v37 = vld [vmem:[%s1929_s24 + $0x20] sm:$0xff]  ;;  %v282_v45 = vld [vmem:[%s1929_s24 + $0x28] sm:$0xff]  ;;  %s1759_s29 = scalar_lea.hbm %s1758_s26, 256  ;;  %p1764_p1 = scmp.lt.s32.totalorder %s1758_s26, %s2912_s4 }
  0x1c   : > { %1359 = vmatpush.msra.mxu2 %v342_v3  ;;  %1360 = vmatpush.msra.mxu3 %v342_v3  ;;  %v288_v30 = vld [vmem:[%s1929_s24 + $0x58] sm:$0xff]  ;;  %v312_v33 = vmul.f32 %v280_v29, %v280_v29  ;;  %v289_v38 = vld [vmem:[%s1929_s24 + $0x60] sm:$0xff]  ;;  %v313_v41 = vmul.f32 %v281_v37, %v281_v37  ;;  %v290_v46 = vld [vmem:[%s1929_s24 + $0x68] sm:$0xff]  ;;  %v314_v49 = vmul.f32 %v282_v45, %v282_v45  ;;  %p1760_p12 = scmp.ne.s32.totalorder %s1758_s26, %s1759_s29  ;;  %p1765_p2 = scmp.lt.s32.totalorder %s1763_s7, %s1759_s29 }
  0x1d   : > { %458 = vmatpush.msra.mxu0 %v341_v4  ;;  %1361 = vmatpush.msra.mxu1 %v341_v4  ;;  %v296_v31 = vld [vmem:[%s1929_s24 + $0x98] sm:$0xff]  ;;  %v320_v34 = vmul.f32 %v288_v30, %v288_v30  ;;  %v297_v39 = vld [vmem:[%s1929_s24 + $0xa0] sm:$0xff]  ;;  %v321_v42 = vmul.f32 %v289_v38, %v289_v38  ;;  %v298_v47 = vld [vmem:[%s1929_s24 + $0xa8] sm:$0xff]  ;;  %v322_v50 = vmul.f32 %v290_v46, %v290_v46 }
  0x1e   : > { %1362 = vmatpush.msra.mxu2 %v341_v4  ;;  %1363 = vmatpush.msra.mxu3 %v341_v4  ;;  %v304_v32 = vld [vmem:[%s1929_s24 + $0xd8] sm:$0xff]  ;;  %v328_v35 = vmul.f32 %v296_v31, %v296_v31  ;;  %v305_v40 = vld [vmem:[%s1929_s24 + $0xe0] sm:$0xff]  ;;  %v329_v43 = vmul.f32 %v297_v39, %v297_v39  ;;  %v306_v48 = vld [vmem:[%s1929_s24 + $0xe8] sm:$0xff]  ;;  %v330_v51 = vmul.f32 %v298_v47, %v298_v47  ;;  %p1761_p13 = pnand %p1760_p12, %p1890_p4  ;;  %p1766_p3 = por %p1765_p2, %p1764_p1 }
  0x1f   : > { %1311 = vmatmul.msk.f32.vlgmr.msra.gmra.mxu0 %vm346_vm0, %v309_v8  ;;  %1319 = vmatmul.msk.f32.vlgmr.msra.gmra.mxu1 %vm346_vm0, %v317_v9  ;;  %v336_v36 = vmul.f32 %v304_v32, %v304_v32  ;;  %v337_v44 = vmul.f32 %v305_v40, %v305_v40  ;;  %v338_v52 = vmul.f32 %v306_v48, %v306_v48  ;;  %v283_v53 = vld [vmem:[%s1929_s24 + $0x30] sm:$0xff]  ;;  %v284_v61 = vld [vmem:[%s1929_s24 + $0x38] sm:$0xff]  ;;  %v940_v5 = vld [vmem:[%s2000_s30] sm:$0xff] }
  0x20   : > { %1327 = vmatmul.msk.f32.vlgmr.msra.gmra.mxu2 %vm346_vm0, %v325_v10  ;;  %1335 = vmatmul.msk.f32.vlgmr.msra.gmra.mxu3 %vm346_vm0, %v333_v12  ;;  %v291_v54 = vld [vmem:[%s1929_s24 + $0x70] sm:$0xff]  ;;  %v315_v57 = vmul.f32 %v283_v53, %v283_v53  ;;  %v292_v62 = vld [vmem:[%s1929_s24 + $0x78] sm:$0xff]  ;;  %v316_v1 = vmul.f32 %v284_v61, %v284_v61  ;;  %v2003_v6 = vmul.f32 4.0, %v940_v5  ;;  %v948_v7 = vld [vmem:[%s2000_s30 + $0x40] sm:$0xff]  ;;  %p1762_p0 = pneg %p1761_p13 }
  0x21   : > { %v299_v55 = vld [vmem:[%s1929_s24 + $0xb0] sm:$0xff]  ;;  %v323_v58 = vmul.f32 %v291_v54, %v291_v54  ;;  %v300_v63 = vld [vmem:[%s1929_s24 + $0xb8] sm:$0xff]  ;;  %v324_v2 = vmul.f32 %v292_v62, %v292_v62  ;;  %v2006_v8 = vmul.f32 4.0, %v948_v7  ;;  %v956_v11 = vld [vmem:[%s2000_s30 + $0x80] sm:$0xff] }
  0x22   : > { %v307_v56 = vld [vmem:[%s1929_s24 + $0xf0] sm:$0xff]  ;;  %v331_v59 = vmul.f32 %v299_v55, %v299_v55  ;;  %v308_v0 = vld [vmem:[%s1929_s24 + $0xf8] sm:$0xff]  ;;  %v332_v3 = vmul.f32 %v300_v63, %v300_v63  ;;  %v1366_v9 = vcvt.f32.s32 %v2003_v6  ;;  %v964_v12 = vld [vmem:[%s2000_s30 + $0xc0] sm:$0xff]  ;;  %v2012_v14 = vmul.f32 4.0, %v956_v11  ;;  %s1169_s24 = scalar_lea.sflag [#allocation3], %s251_s5  ;;  %p1767_p5 = pnand %p1766_p3, %p1762_p0 }
  0x23   : > { %v339_v60 = vmul.f32 %v307_v56, %v307_v56  ;;  %v340_v4 = vmul.f32 %v308_v0, %v308_v0  ;;  %v1430_v10 = vcvt.f32.s32 %v2006_v8  ;;  %v2014_v15 = vmul.f32 4.0, %v964_v12  ;;  %v941_v16 = vld [vmem:[%s2000_s30 + $0x8] sm:$0xff] }
  0x24   : > { %v1367_v13 = vcvt.s32.f32 %v1366_v9  ;;  %v2020_v21 = vmul.f32 4.0, %v941_v16  ;;  %v1364_v24 = vand.u32 2147483647, %v2003_v6  ;;  %v1433_v31 = vand.u32 2147483648, %v2006_v8  ;;  %v957_v37 = vld [vmem:[%s2000_s30 + $0x88] sm:$0xff] }
  0x25   : > { %v1497_v39 = vand.u32 2147483648, %v2012_v14 }
  0x26   : > { %v1368_v23 = vand.u32 2147483647, %v1367_v13  ;;  %vm2029_vm1 = vcmp.lt.f32.partialorder %v1364_v24, 8388608.0  ;;  %v1372_v45 = vand.u32 2147483647, %v2020_v21 }
  0x27   : > { %1312 = vmatmul.msk.f32.gmra.mxu0 %vm346_vm0, %v310_v17  ;;  %1320 = vmatmul.msk.f32.gmra.mxu1 %vm346_vm0, %v318_v18  ;;  %v1494_v17 = vcvt.f32.s32 %v2012_v14  ;;  %v1558_v18 = vcvt.f32.s32 %v2014_v15 }
  0x28   : > { %1328 = vmatmul.msk.f32.gmra.mxu2 %vm346_vm0, %v326_v19  ;;  %1336 = vmatmul.msk.f32.gmra.mxu3 %vm346_vm0, %v334_v20  ;;  %v949_v19 = vld [vmem:[%s2000_s30 + $0x48] sm:$0xff]  ;;  %v1431_v20 = vcvt.s32.f32 %v1430_v10  ;;  %vm2071_vm5 = vcmp.lt.f32.partialorder %v1372_v45, 8388608.0 }
  0x29   : > { %v2022_v22 = vmul.f32 4.0, %v949_v19  ;;  %v1559_v29 = vcvt.s32.f32 %v1558_v18 }
  0x2a   : > { %v1432_v30 = vand.u32 2147483647, %v1431_v20 }
  0x2b   : > { %v1560_v40 = vand.u32 2147483647, %v1559_v29  ;;  %v1441_v55 = vand.u32 2147483648, %v2022_v22 }
  0x2f   : > { %1313 = vmatmul.msk.f32.gmra.mxu0 %vm346_vm0, %v311_v25  ;;  %1321 = vmatmul.msk.f32.gmra.mxu1 %vm346_vm0, %v319_v26  ;;  %v1369_v25 = vand.u32 2147483648, %v2003_v6  ;;  %v1374_v26 = vcvt.f32.s32 %v2020_v21 }
  0x30   : > { %1329 = vmatmul.msk.f32.gmra.mxu2 %vm346_vm0, %v327_v27  ;;  %1337 = vmatmul.msk.f32.gmra.mxu3 %vm346_vm0, %v335_v28  ;;  %v1438_v27 = vcvt.f32.s32 %v2022_v22  ;;  %v1495_v28 = vcvt.s32.f32 %v1494_v17 }
  0x31   : > { %v1375_v32 = vcvt.s32.f32 %v1374_v26 }
  0x32   : > { %v1496_v38 = vand.u32 2147483647, %v1495_v28 }
  0x33   : > { %v1376_v48 = vand.u32 2147483647, %v1375_v32 }
  0x34   : > { %v1498_v56 = vor.u32 %v1497_v39, %v1496_v38 }
  0x37   : > { %1314 = vmatmul.msk.f32.gmra.mxu0 %vm346_vm0, %v312_v33  ;;  %1322 = vmatmul.msk.f32.gmra.mxu1 %vm346_vm0, %v320_v34  ;;  %v1439_v33 = vcvt.s32.f32 %v1438_v27 }
  0x38   : > { %1330 = vmatmul.msk.f32.gmra.mxu2 %vm346_vm0, %v328_v35  ;;  %1338 = vmatmul.msk.f32.gmra.mxu3 %vm346_vm0, %v336_v36  ;;  %v1370_v35 = vor.u32 %v1369_v25, %v1368_v23  ;;  %v1428_v36 = vand.u32 2147483647, %v2006_v8 }
  0x3a   : > { %vm2047_vm2 = vcmp.lt.f32.partialorder %v1428_v36, 8388608.0 }
  0x3f   : > { %1315 = vmatmul.msk.f32.gmra.mxu0 %vm346_vm0, %v313_v41  ;;  %1323 = vmatmul.msk.f32.gmra.mxu1 %vm346_vm0, %v321_v42  ;;  %v1561_v41 = vand.u32 2147483648, %v2014_v15  ;;  %v1434_v42 = vor.u32 %v1433_v31, %v1432_v30  ;;  %v942_v31 = vld [vmem:[%s2000_s30 + $0x10] sm:$0xff] }
  0x40   : > { %1331 = vmatmul.msk.f32.gmra.mxu2 %vm346_vm0, %v329_v43  ;;  %1339 = vmatmul.msk.f32.gmra.mxu3 %vm346_vm0, %v337_v44  ;;  %v1492_v43 = vand.u32 2147483647, %v2012_v14  ;;  %v1556_v44 = vand.u32 2147483647, %v2014_v15 }
  0x41   : > { %v1435_v62 = vsel %vm2047_vm2, %v1434_v42, %v2006_v8 }
  0x42   : > { %vm2057_vm3 = vcmp.lt.f32.partialorder %v1492_v43, 8388608.0  ;;  %vm2061_vm4 = vcmp.lt.f32.partialorder %v1556_v44, 8388608.0  ;;  %v2087_v8 = vmul.f32 0.25, %v1435_v62 }
  0x47   : > { %1316 = vmatmul.msk.f32.gmra.mxu0 %vm346_vm0, %v314_v49  ;;  %1324 = vmatmul.msk.f32.gmra.mxu1 %vm346_vm0, %v322_v50  ;;  %v1377_v49 = vand.u32 2147483648, %v2020_v21  ;;  %v1440_v50 = vand.u32 2147483647, %v1439_v33 }
  0x48   : > { %1332 = vmatmul.msk.f32.gmra.mxu2 %vm346_vm0, %v330_v51  ;;  %1340 = vmatmul.msk.f32.gmra.mxu3 %vm346_vm0, %v338_v52  ;;  %v2041_v51 = vmul.f32 4.0, %v957_v37 }
  0x49   : > { %v1378_v63 = vor.u32 %v1377_v49, %v1376_v48 }
  0x4a   : > { %v1502_v0 = vcvt.f32.s32 %v2041_v51  ;;  %v1500_v27 = vand.u32 2147483647, %v2041_v51  ;;  %v1505_v33 = vand.u32 2147483648, %v2041_v51 }
  0x4c   : > { %v1503_v17 = vcvt.s32.f32 %v1502_v0  ;;  %vm2128_vm10 = vcmp.lt.f32.partialorder %v1500_v27, 8388608.0 }
  0x4f   : > { %1317 = vmatmul.msk.f32.gmra.mxu0 %vm346_vm0, %v315_v57  ;;  %1325 = vmatmul.msk.f32.gmra.mxu1 %vm346_vm0, %v323_v58  ;;  %v1562_v57 = vor.u32 %v1561_v41, %v1560_v40  ;;  %v1436_v58 = vand.u32 2147483647, %v2022_v22  ;;  %v2132_v40 = vmul.f32 4.0, %v942_v31 }
  0x50   : > { %1333 = vmatmul.msk.f32.gmra.mxu2 %vm346_vm0, %v331_v59  ;;  %1341 = vmatmul.msk.f32.gmra.mxu3 %vm346_vm0, %v339_v60  ;;  %v1371_v59 = vsel %vm2029_vm1, %v1370_v35, %v2003_v6 }
  0x51   : > { %v1563_v5 = vsel %vm2061_vm4, %v1562_v57, %v2014_v15  ;;  %vm2081_vm6 = vcmp.lt.f32.partialorder %v1436_v58, 8388608.0  ;;  %v2085_v7 = vmul.f32 0.25, %v1371_v59  ;;  %v1379_v15 = vsel %vm2071_vm5, %v1378_v63, %v2020_v21 }
  0x52   : > { %v2100_v20 = vmul.f32 0.25, %v1563_v5  ;;  %v2114_v29 = vmul.f32 0.25, %v1379_v15 }
  0x57   : > { %1318 = vmatmul.msk.f32.gmra.mxu0 %vm346_vm0, %v316_v1  ;;  %1326 = vmatmul.msk.f32.gmra.mxu1 %vm346_vm0, %v324_v2  ;;  %v965_v1 = vld [vmem:[%s2000_s30 + $0xc8] sm:$0xff] }
  0x58   : > { %1334 = vmatmul.msk.f32.gmra.mxu2 %vm346_vm0, %v332_v3  ;;  %1342 = vmatmul.msk.f32.gmra.mxu3 %vm346_vm0, %v340_v4  ;;  %v1442_v3 = vor.u32 %v1441_v55, %v1440_v50  ;;  %v1499_v4 = vsel %vm2057_vm3, %v1498_v56, %v2012_v14  ;;  %v2089_v11 = vmul.f32 4.0, %v965_v1 }
  0x59   : > { %v2098_v19 = vmul.f32 0.25, %v1499_v4 }
  0x5a   : > { %v1443_v24 = vsel %vm2081_vm6, %v1442_v3, %v2022_v22  ;;  %v1566_v30 = vcvt.f32.s32 %v2089_v11  ;;  %v1504_v22 = vand.u32 2147483647, %v1503_v17  ;;  %v1564_v44 = vand.u32 2147483647, %v2089_v11 }
  0x5b   : > { %v2123_v37 = vmul.f32 0.25, %v1443_v24 }
  0x5c   : > { %v2136_v45 = vcvt.s32.f32 %v1566_v30  ;;  %v1506_v50 = vor.u32 %v1505_v33, %v1504_v22  ;;  %vm2185_vm2 = vcmp.lt.f32.partialorder %v1564_v44, 8388608.0 }
  0x9c   : > { %v460_v46 = vpop.f32.mrf.mxu0  ;;  %v484_v47 = vpop.f32.mrf.mxu1 }
  0x9d   : > { %v2043_v52 = vadd.f32 1e-16, %v460_v46  ;;  %v2045_v53 = vadd.f32 1e-16, %v484_v47  ;;  %v1569_v46 = vand.u32 2147483648, %v2089_v11 }
  0x9f   : > { %1678 = vrsqrt.f32 %v2043_v52  ;;  %vm563_vm7 = vcmp.eq.f32.partialorder %v2043_v52, inf  ;;  %v566_v34 = vand.u32 2147483648, %v2043_v52  ;;  %v662_v36 = vand.u32 2147483648, %v2045_v53 }
  0xa0   : > { %1680 = vrsqrt.f32 %v2045_v53  ;;  %vm565_vm8 = vcmp.eq.f32.partialorder %v2043_v52, 0.0  ;;  %vm659_vm9 = vcmp.eq.f32.partialorder %v2045_v53, inf  ;;  %vm661_vm11 = vcmp.eq.f32.partialorder %v2045_v53, 0.0 }
  0xa3   : > { %v508_v9 = vpop.f32.mrf.mxu2  ;;  %v532_v10 = vpop.f32.mrf.mxu3 }
  0xa4   : > { %v2091_v12 = vadd.f32 1e-16, %v508_v9  ;;  %v2093_v13 = vadd.f32 1e-16, %v532_v10  ;;  %v463_v14 = vpop.f32.mrf.mxu0  ;;  %v487_v16 = vpop.f32.mrf.mxu1  ;;  %v1507_v10 = vsel %vm2128_vm10, %v1506_v50, %v2041_v51 }
  0xa5   : > { %v1679_v18 = vpop.eup %1678  ;;  %v2102_v23 = vadd.f32 1e-16, %v463_v14  ;;  %v2109_v21 = vadd.f32 1e-16, %v487_v16  ;;  %v2161_v14 = vld [vmem:[%s2910_s2] ss:$0 sm:$0xff] }
  0xa6   : > { %v1681_v25 = vpop.eup %1680  ;;  %v557_v26 = vmul.f32 %v1679_v18, %v2043_v52  ;;  %1682 = vrsqrt.f32 %v2091_v12  ;;  %v758_v58 = vand.u32 2147483648, %v2091_v12  ;;  %v854_v59 = vand.u32 2147483648, %v2093_v13 }
  0xa7   : > { %v653_v28 = vmul.f32 %v1681_v25, %v2045_v53  ;;  %1684 = vrsqrt.f32 %v2093_v13  ;;  %v578_v63 = vand.u32 2147483648, %v2102_v23  ;;  %v674_v3 = vand.u32 2147483648, %v2109_v21 }
  0xa8   : > { %v558_v32 = vmul.f32 %v1679_v18, %v557_v26  ;;  %1686 = vrsqrt.f32 %v2102_v23  ;;  %vm755_vm12 = vcmp.eq.f32.partialorder %v2091_v12, inf  ;;  %vm757_vm13 = vcmp.eq.f32.partialorder %v2091_v12, 0.0 }
  0xa9   : > { %v654_v35 = vmul.f32 %v1681_v25, %v653_v28  ;;  %1688 = vrsqrt.f32 %v2109_v21  ;;  %vm851_vm14 = vcmp.eq.f32.partialorder %v2093_v13, inf  ;;  %vm853_vm15 = vcmp.eq.f32.partialorder %v2093_v13, 0.0 }
  0xaa   : > { %v559_v38 = vmul.f32 0.5, %v558_v32  ;;  %vm575_vm0 = vcmp.eq.f32.partialorder %v2102_v23, inf  ;;  %vm577_vm1 = vcmp.eq.f32.partialorder %v2102_v23, 0.0  ;;  %vm671_vm3 = vcmp.eq.f32.partialorder %v2109_v21, inf  ;;  %v950_v32 = vld [vmem:[%s2000_s30 + $0x50] sm:$0xff] }
  0xab   : > { %v655_v41 = vmul.f32 0.5, %v654_v35  ;;  %v511_v42 = vpop.f32.mrf.mxu2  ;;  %v535_v43 = vpop.f32.mrf.mxu3  ;;  %vm673_vm4 = vcmp.eq.f32.partialorder %v2109_v21, 0.0 }
  0xac   : > { %v1683_v47 = vpop.eup %1682  ;;  %v560_v48 = vsub.f32 1.5, %v559_v38  ;;  %v2139_v49 = vadd.f32 1e-16, %v511_v42  ;;  %v2141_v54 = vadd.f32 1e-16, %v535_v43  ;;  %v466_v4 = vpop.f32.mrf.mxu0 }
  0xad   : > { %v1685_v55 = vpop.eup %1684  ;;  %v656_v56 = vsub.f32 1.5, %v655_v41  ;;  %v749_v57 = vmul.f32 %v1683_v47, %v2091_v12  ;;  %v2177_v26 = vadd.f32 1e-16, %v466_v4 }
  0xae   : > { %v1687_v60 = vpop.eup %1686  ;;  %v561_v61 = vmul.f32 %v1679_v18, %v560_v48  ;;  %v845_v62 = vmul.f32 %v1685_v55, %v2093_v13  ;;  %1690 = vrsqrt.f32 %v2139_v49  ;;  %vm767_vm5 = vcmp.eq.f32.partialorder %v2139_v49, inf }
  0xaf   : > { %v657_v0 = vmul.f32 %v1681_v25, %v656_v56  ;;  %v750_v1 = vmul.f32 %v1683_v47, %v749_v57  ;;  %v569_v2 = vmul.f32 %v1687_v60, %v2102_v23  ;;  %v1689_v5 = vpop.eup %1688  ;;  %1692 = vrsqrt.f32 %v2141_v54 }
  0xb0   : > { %v562_v6 = vmul.f32 %v561_v61, %v2043_v52  ;;  %v846_v9 = vmul.f32 %v1685_v55, %v845_v62  ;;  %v665_v18 = vmul.f32 %v1689_v5, %v2109_v21  ;;  %v1568_v25 = vand.u32 2147483647, %v2136_v45 }
  0xb1   : > { %v658_v15 = vmul.f32 %v657_v0, %v2045_v53  ;;  %v751_v16 = vmul.f32 0.5, %v750_v1  ;;  %v570_v17 = vmul.f32 %v1687_v60, %v569_v2  ;;  %vm769_vm6 = vcmp.eq.f32.partialorder %v2139_v49, 0.0 }
  0xb2   : > { %v564_v51 = vsel %vm563_vm7, %v2043_v52, %v562_v6  ;;  %v847_v24 = vmul.f32 0.5, %v846_v9  ;;  %v666_v35 = vmul.f32 %v1689_v5, %v665_v18  ;;  %v1570_v57 = vor.u32 %v1569_v46, %v1568_v25 }
  0xb3   : > { %v567_v27 = vsel %vm565_vm8, %v566_v34, %v564_v51  ;;  %v660_v28 = vsel %vm659_vm9, %v2045_v53, %v658_v15  ;;  %v752_v30 = vsub.f32 1.5, %v751_v16  ;;  %v571_v31 = vmul.f32 0.5, %v570_v17 }
  0xb4   : > { %v1691_v22 = vpop.eup %1690  ;;  %v1069_v33 = vmul.f32 %v2085_v7, %v567_v27  ;;  %v663_v52 = vsel %vm661_vm11, %v662_v36, %v660_v28  ;;  %v848_v34 = vsub.f32 1.5, %v847_v24  ;;  %v667_v45 = vmul.f32 0.5, %v666_v35 }
  0xb5   : > { %v1077_v38 = vmul.f32 %v2087_v8, %v663_v52  ;;  %v753_v39 = vmul.f32 %v1683_v47, %v752_v30  ;;  %v572_v41 = vsub.f32 1.5, %v571_v31  ;;  %v761_v42 = vmul.f32 %v1691_v22, %v2139_v49  ;;  %v1693_v43 = vpop.eup %1692  ;;  %v490_v31 = vpop.f32.mrf.mxu1 }
  0xb6   : > { %v1104_v44 = vadd.f32 %v2161_v14, %v1069_v33  ;;  %v849_v7 = vmul.f32 %v1685_v55, %v848_v34  ;;  %v1053_v53 = vmul.f32 0.25, %v1507_v10  ;;  %v668_v56 = vsub.f32 1.5, %v667_v45  ;;  %v514_v34 = vpop.f32.mrf.mxu2 }
  0xb7   : > { %v1112_v36 = vadd.f32 %v2161_v14, %v1077_v38  ;;  %v754_v48 = vmul.f32 %v753_v39, %v2091_v12  ;;  %v573_v50 = vmul.f32 %v1687_v60, %v572_v41  ;;  %v762_v8 = vmul.f32 %v1691_v22, %v761_v42 }
  0xb8   : > { %1136 = vst [vmem:[%s2202_s9] sm:$0xff] %v1104_v44  ;;  %v850_v47 = vmul.f32 %v849_v7, %v2093_v13  ;;  %v857_v55 = vmul.f32 %v1693_v43, %v2141_v54  ;;  %1694 = vrsqrt.f32 %v2177_v26  ;;  %v669_v1 = vmul.f32 %v1689_v5, %v668_v56 }
  0xb9   : > { %1144 = vst [vmem:[%s2202_s9 + $0x40] sm:$0xff] %v1112_v36  ;;  %v756_v60 = vsel %vm755_vm12, %v2091_v12, %v754_v48  ;;  %v574_v61 = vmul.f32 %v573_v50, %v2102_v23  ;;  %v763_v62 = vmul.f32 0.5, %v762_v8  ;;  %v770_v16 = vand.u32 2147483648, %v2139_v49 }
  0xba   : > { %v759_v0 = vsel %vm757_vm13, %v758_v58, %v756_v60  ;;  %v852_v46 = vsel %vm851_vm14, %v2093_v13, %v850_v47  ;;  %v858_v2 = vmul.f32 %v1693_v43, %v857_v55  ;;  %vm863_vm7 = vcmp.eq.f32.partialorder %v2141_v54, inf  ;;  %v538_v60 = vpop.f32.mrf.mxu3 }
  0xbb   : > { %v1085_v4 = vmul.f32 %v2098_v19, %v759_v0  ;;  %v855_v6 = vsel %vm853_vm15, %v854_v59, %v852_v46  ;;  %v576_v9 = vsel %vm575_vm0, %v2102_v23, %v574_v61  ;;  %v764_v12 = vsub.f32 1.5, %v763_v62 }
  0xbc   : > { %v1093_v58 = vmul.f32 %v2100_v20, %v855_v6  ;;  %v579_v5 = vsel %vm577_vm1, %v578_v63, %v576_v9  ;;  %v670_v19 = vmul.f32 %v669_v1, %v2109_v21  ;;  %v859_v10 = vmul.f32 0.5, %v858_v2  ;;  %v966_v2 = vld [vmem:[%s2000_s30 + $0xd0] sm:$0xff] }
  0xbd   : > { %v1120_v13 = vadd.f32 %v2161_v14, %v1085_v4  ;;  %v1070_v59 = vmul.f32 %v2114_v29, %v579_v5  ;;  %v765_v15 = vmul.f32 %v1691_v22, %v764_v12  ;;  %v1571_v63 = vsel %vm2185_vm2, %v1570_v57, %v2089_v11  ;;  %v958_v57 = vld [vmem:[%s2000_s30 + $0x90] sm:$0xff] }
  0xbe   : > { %v1128_v17 = vadd.f32 %v2161_v14, %v1093_v58  ;;  %v672_v20 = vsel %vm671_vm3, %v2109_v21, %v670_v19  ;;  %v860_v23 = vsub.f32 1.5, %v859_v10  ;;  %v1695_v18 = vpop.eup %1694  ;;  %vm865_vm8 = vcmp.eq.f32.partialorder %v2141_v54, 0.0  ;;  %v469_v19 = vpop.f32.mrf.mxu0 }
  0xbf   : > { %1152 = vst [vmem:[%s2202_s9 + $0x80] sm:$0xff] %v1120_v13  ;;  %v1105_v29 = vadd.f32 %v2161_v14, %v1070_v59  ;;  %v675_v51 = vsel %vm673_vm4, %v674_v3, %v672_v20  ;;  %v766_v24 = vmul.f32 %v765_v15, %v2139_v49  ;;  %v581_v11 = vmul.f32 %v1695_v18, %v2177_v26 }
  0xc0   : > { %1160 = vst [vmem:[%s2202_s9 + $0xc0] sm:$0xff] %v1128_v17  ;;  %v1078_v25 = vmul.f32 %v2123_v37, %v675_v51  ;;  %v861_v27 = vmul.f32 %v1693_v43, %v860_v23  ;;  %v1061_v21 = vmul.f32 0.25, %v1571_v63  ;;  %v1380_v3 = vand.u32 2147483647, %v2132_v40  ;;  %v943_v23 = vld [vmem:[%s2000_s30 + $0x18] sm:$0xff] }
  0xc1   : > { %1137 = vst [vmem:[%s2202_s9 + $0x8] sm:$0xff] %v1105_v29  ;;  %v768_v28 = vsel %vm767_vm5, %v2139_v49, %v766_v24  ;;  %v1382_v30 = vcvt.f32.s32 %v2132_v40  ;;  %v582_v52 = vmul.f32 %v1695_v18, %v581_v11  ;;  %v866_v38 = vand.u32 2147483648, %v2141_v54 }
  0xc2   : > { %v1113_v37 = vadd.f32 %v2161_v14, %v1078_v25  ;;  %v771_v22 = vsel %vm769_vm6, %v770_v16, %v768_v28  ;;  %v862_v33 = vmul.f32 %v861_v27, %v2141_v54  ;;  %v1385_v41 = vand.u32 2147483648, %v2132_v40 }
  0xc3   : > { %v1086_v35 = vmul.f32 %v1053_v53, %v771_v22  ;;  %v1383_v39 = vcvt.s32.f32 %v1382_v30  ;;  %v583_v43 = vmul.f32 0.5, %v582_v52  ;;  %v2277_v44 = vadd.f32 1e-16, %v490_v31 }
  0xc4   : > { %1145 = vst [vmem:[%s2202_s9 + $0x48] sm:$0xff] %v1113_v37  ;;  %v864_v42 = vsel %vm863_vm7, %v2141_v54, %v862_v33  ;;  %v2279_v49 = vmul.f32 4.0, %v950_v32  ;;  %v2284_v36 = vadd.f32 1e-16, %v514_v34  ;;  %vm1381_vm9 = vcmp.lt.f32.partialorder %v1380_v3, 8388608.0 }
  0xc5   : > { %v1121_v7 = vadd.f32 %v2161_v14, %v1086_v35  ;;  %v867_v45 = vsel %vm865_vm8, %v866_v38, %v864_v42  ;;  %v1384_v53 = vand.u32 2147483647, %v1383_v39  ;;  %v584_v50 = vsub.f32 1.5, %v583_v43 }
  0xc6   : > { %v1094_v48 = vmul.f32 %v1061_v21, %v867_v45  ;;  %1696 = vrsqrt.f32 %v2277_v44  ;;  %v1444_v55 = vand.u32 2147483647, %v2279_v49  ;;  %v1446_v54 = vcvt.f32.s32 %v2279_v49 }
  0xc7   : > { %1153 = vst [vmem:[%s2202_s9 + $0x88] sm:$0xff] %v1121_v7  ;;  %v1386_v8 = vor.u32 %v1385_v41, %v1384_v53  ;;  %v585_v56 = vmul.f32 %v1695_v18, %v584_v50  ;;  %1698 = vrsqrt.f32 %v2284_v36  ;;  %v1449_v1 = vand.u32 2147483648, %v2279_v49 }
  0xc8   : > { %v1129_v47 = vadd.f32 %v2161_v14, %v1094_v48  ;;  %v1447_v46 = vcvt.s32.f32 %v1446_v54  ;;  %vm587_vm10 = vcmp.eq.f32.partialorder %v2177_v26, inf  ;;  %v590_v4 = vand.u32 2147483648, %v2177_v26 }
  0xc9   : > { %v1387_v61 = vsel %vm1381_vm9, %v1386_v8, %v2132_v40  ;;  %v586_v62 = vmul.f32 %v585_v56, %v2177_v26  ;;  %v990_v6 = vmul.f32 4.0, %v958_v57  ;;  %v2300_v9 = vadd.f32 1e-16, %v538_v60 }
  0xca   : > { %1161 = vst [vmem:[%s2202_s9 + $0xc8] sm:$0xff] %v1129_v47  ;;  %v1038_v0 = vmul.f32 0.25, %v1387_v61  ;;  %vm589_vm11 = vcmp.eq.f32.partialorder %v2177_v26, 0.0  ;;  %vm2304_vm12 = vcmp.lt.f32.partialorder %v1444_v55, 8388608.0  ;;  %v1448_v5 = vand.u32 2147483647, %v1447_v46 }
  0xcb   : > { %v588_v40 = vsel %vm587_vm10, %v2177_v26, %v586_v62  ;;  %v1510_v59 = vcvt.f32.s32 %v990_v6  ;;  %v2309_v15 = vmul.f32 4.0, %v966_v2  ;;  %v1508_v20 = vand.u32 2147483647, %v990_v6  ;;  %v951_v61 = vld [vmem:[%s2000_s30 + $0x58] sm:$0xff] }
  0xcc   : > { %v1697_v12 = vpop.eup %1696  ;;  %v591_v10 = vsel %vm589_vm11, %v590_v4, %v588_v40  ;;  %v1450_v17 = vor.u32 %v1449_v1, %v1448_v5  ;;  %1700 = vrsqrt.f32 %v2300_v9  ;;  %v1513_v29 = vand.u32 2147483648, %v990_v6 }
  0xcd   : > { %v677_v13 = vmul.f32 %v1697_v12, %v2277_v44  ;;  %v1071_v16 = vmul.f32 %v1038_v0, %v591_v10  ;;  %v1699_v26 = vpop.eup %1698  ;;  %v1511_v18 = vcvt.s32.f32 %v1510_v59  ;;  %v2313_v51 = vadd.f32 1e-16, %v469_v19 }
  0xce   : > { %vm683_vm13 = vcmp.eq.f32.partialorder %v2277_v44, inf  ;;  %v773_v25 = vmul.f32 %v1699_v26, %v2284_v36  ;;  %vm685_vm14 = vcmp.eq.f32.partialorder %v2277_v44, 0.0  ;;  %v686_v11 = vand.u32 2147483648, %v2277_v44 }
  0xcf   : > { %v678_v63 = vmul.f32 %v1697_v12, %v677_v13  ;;  %v1106_v24 = vadd.f32 %v2161_v14, %v1071_v16  ;;  %v1512_v28 = vand.u32 2147483647, %v1511_v18  ;;  %v2320_v21 = vmul.f32 4.0, %v943_v23  ;;  %v517_v18 = vpop.f32.mrf.mxu2 }
  0xd0   : > { %v1451_v3 = vsel %vm2304_vm12, %v1450_v17, %v2279_v49  ;;  %v774_v30 = vmul.f32 %v1699_v26, %v773_v25  ;;  %vm2326_vm15 = vcmp.lt.f32.partialorder %v1508_v20, 8388608.0  ;;  %v1574_v32 = vcvt.f32.s32 %v2309_v15  ;;  %v493_v49 = vpop.f32.mrf.mxu1 }
  0xd1   : > { %v679_v27 = vmul.f32 0.5, %v678_v63  ;;  %1138 = vst [vmem:[%s2202_s9 + $0x10] sm:$0xff] %v1106_v24  ;;  %vm779_vm0 = vcmp.eq.f32.partialorder %v2284_v36, inf  ;;  %v1514_v22 = vor.u32 %v1513_v29, %v1512_v28  ;;  %v1572_v33 = vand.u32 2147483647, %v2309_v15 }
  0xd2   : > { %1702 = vrsqrt.f32 %v2313_v51  ;;  %v1701_v52 = vpop.eup %1700  ;;  %v775_v34 = vmul.f32 0.5, %v774_v30  ;;  %vm781_vm1 = vcmp.eq.f32.partialorder %v2284_v36, 0.0  ;;  %v1575_v35 = vcvt.s32.f32 %v1574_v32 }
  0xd3   : > { %v680_v37 = vsub.f32 1.5, %v679_v27  ;;  %v1577_v38 = vand.u32 2147483648, %v2309_v15  ;;  %v782_v41 = vand.u32 2147483648, %v2284_v36  ;;  %v1515_v42 = vsel %vm2326_vm15, %v1514_v22, %v990_v6  ;;  %v541_v27 = vpop.f32.mrf.mxu3 }
  0xd4   : > { %v869_v43 = vmul.f32 %v1701_v52, %v2300_v9  ;;  %v1046_v7 = vmul.f32 0.25, %v1451_v3  ;;  %v776_v45 = vsub.f32 1.5, %v775_v34  ;;  %v1576_v53 = vand.u32 2147483647, %v1575_v35 }
  0xd5   : > { %v681_v39 = vmul.f32 %v1697_v12, %v680_v37  ;;  %v1388_v48 = vand.u32 2147483647, %v2320_v21  ;;  %vm2342_vm2 = vcmp.lt.f32.partialorder %v1572_v33, 8388608.0  ;;  %v1390_v56 = vcvt.f32.s32 %v2320_v21 }
  0xd6   : > { %v870_v8 = vmul.f32 %v1701_v52, %v869_v43  ;;  %v777_v55 = vmul.f32 %v1699_v26, %v776_v45  ;;  %v1054_v54 = vmul.f32 0.25, %v1515_v42  ;;  %v1578_v57 = vor.u32 %v1577_v38, %v1576_v53 }
  0xd7   : > { %v682_v50 = vmul.f32 %v681_v39, %v2277_v44  ;;  %v2347_v60 = vadd.f32 1e-16, %v493_v49  ;;  %v1391_v1 = vcvt.s32.f32 %v1390_v56  ;;  %v1393_v2 = vand.u32 2147483648, %v2320_v21 }
  0xd8   : > { %v1703_v62 = vpop.eup %1702  ;;  %v871_v46 = vmul.f32 0.5, %v870_v8  ;;  %v778_v6 = vmul.f32 %v777_v55, %v2284_v36  ;;  %vm2358_vm3 = vcmp.lt.f32.partialorder %v1388_v48, 8388608.0  ;;  %v2362_v10 = vmul.f32 4.0, %v951_v61  ;;  %v967_v8 = vld [vmem:[%s2000_s30 + $0xd8] sm:$0xff] }
  0xd9   : > { %v684_v0 = vsel %vm683_vm13, %v2277_v44, %v682_v50  ;;  %v593_v12 = vmul.f32 %v1703_v62, %v2313_v51  ;;  %v1392_v19 = vand.u32 2147483647, %v1391_v1  ;;  %v1579_v44 = vsel %vm2342_vm2, %v1578_v57, %v2309_v15 }
  0xda   : > { %v687_v4 = vsel %vm685_vm14, %v686_v11, %v684_v0  ;;  %v872_v5 = vsub.f32 1.5, %v871_v46  ;;  %v780_v13 = vsel %vm779_vm0, %v2284_v36, %v778_v6  ;;  %1704 = vrsqrt.f32 %v2347_v60  ;;  %v959_v36 = vld [vmem:[%s2000_s30 + $0x98] sm:$0xff] }
  0xdb   : > { %v1079_v58 = vmul.f32 %v1046_v7, %v687_v4  ;;  %v594_v59 = vmul.f32 %v1703_v62, %v593_v12  ;;  %v783_v17 = vsel %vm781_vm1, %v782_v41, %v780_v13  ;;  %v1394_v23 = vor.u32 %v1393_v2, %v1392_v19 }
  0xdc   : > { %v873_v20 = vmul.f32 %v1701_v52, %v872_v5  ;;  %v1087_v26 = vmul.f32 %v1054_v54, %v783_v17  ;;  %vm875_vm4 = vcmp.eq.f32.partialorder %v2300_v9, inf  ;;  %vm877_vm5 = vcmp.eq.f32.partialorder %v2300_v9, 0.0  ;;  %v472_v54 = vpop.f32.mrf.mxu0 }
  0xdd   : > { %v1114_v16 = vadd.f32 %v2161_v14, %v1079_v58  ;;  %v595_v63 = vmul.f32 0.5, %v594_v59  ;;  %v878_v29 = vand.u32 2147483648, %v2300_v9  ;;  %v1062_v24 = vmul.f32 0.25, %v1579_v44 }
  0xde   : > { %v874_v15 = vmul.f32 %v873_v20, %v2300_v9  ;;  %v1454_v25 = vcvt.f32.s32 %v2362_v10  ;;  %v1122_v11 = vadd.f32 %v2161_v14, %v1087_v26  ;;  %v1395_v3 = vsel %vm2358_vm3, %v1394_v23, %v2320_v21 }
  0xdf   : > { %1146 = vst [vmem:[%s2202_s9 + $0x50] sm:$0xff] %v1114_v16  ;;  %v596_v28 = vsub.f32 1.5, %v595_v63  ;;  %v1452_v30 = vand.u32 2147483647, %v2362_v10  ;;  %v1457_v37 = vand.u32 2147483648, %v2362_v10  ;;  %v2393_v35 = vmul.f32 4.0, %v959_v36 }
  0xe0   : > { %v876_v31 = vsel %vm875_vm4, %v2300_v9, %v874_v15  ;;  %v1455_v32 = vcvt.s32.f32 %v1454_v25  ;;  %v2388_v22 = vadd.f32 1e-16, %v517_v18  ;;  %v1705_v33 = vpop.eup %1704  ;;  %1154 = vst [vmem:[%s2202_s9 + $0x90] sm:$0xff] %v1122_v11  ;;  %v2395_v38 = vadd.f32 1e-16, %v541_v27  ;;  %v944_v63 = vld [vmem:[%s2000_s30 + $0x20] sm:$0xff] }
  0xe1   : > { %v879_v52 = vsel %vm877_vm5, %v878_v29, %v876_v31  ;;  %v597_v34 = vmul.f32 %v1703_v62, %v596_v28  ;;  %v689_v39 = vmul.f32 %v1705_v33, %v2347_v60  ;;  %vm599_vm6 = vcmp.eq.f32.partialorder %v2313_v51, inf  ;;  %v496_v29 = vpop.f32.mrf.mxu1 }
  0xe2   : > { %v1095_v21 = vmul.f32 %v1062_v24, %v879_v52  ;;  %v1456_v41 = vand.u32 2147483647, %v1455_v32  ;;  %1706 = vrsqrt.f32 %v2388_v22  ;;  %v602_v9 = vand.u32 2147483648, %v2313_v51  ;;  %v952_v52 = vld [vmem:[%s2000_s30 + $0x60] sm:$0xff] }
  0xe3   : > { %v598_v42 = vmul.f32 %v597_v34, %v2313_v51  ;;  %v1039_v43 = vmul.f32 0.25, %v1395_v3  ;;  %v690_v7 = vmul.f32 %v1705_v33, %v689_v39  ;;  %vm2403_vm7 = vcmp.lt.f32.partialorder %v1452_v30, 8388608.0 }
  0xe4   : > { %v1130_v49 = vadd.f32 %v2161_v14, %v1095_v21  ;;  %v1458_v53 = vor.u32 %v1457_v37, %v1456_v41  ;;  %vm601_vm8 = vcmp.eq.f32.partialorder %v2313_v51, 0.0  ;;  %v1518_v50 = vcvt.f32.s32 %v2393_v35 }
  0xe5   : > { %v600_v48 = vsel %vm599_vm6, %v2313_v51, %v598_v42  ;;  %1708 = vrsqrt.f32 %v2395_v38  ;;  %v691_v56 = vmul.f32 0.5, %v690_v7  ;;  %vm695_vm9 = vcmp.eq.f32.partialorder %v2347_v60, inf }
  0xe6   : > { %1162 = vst [vmem:[%s2202_s9 + $0xd0] sm:$0xff] %v1130_v49  ;;  %v603_v47 = vsel %vm601_vm8, %v602_v9, %v600_v48  ;;  %v1516_v55 = vand.u32 2147483647, %v2393_v35  ;;  %v1459_v61 = vsel %vm2403_vm7, %v1458_v53, %v2362_v10  ;;  %v1519_v62 = vcvt.s32.f32 %v1518_v50 }
  0xe7   : > { %v1072_v57 = vmul.f32 %v1039_v43, %v603_v47  ;;  %v1521_v51 = vand.u32 2147483648, %v2393_v35  ;;  %v692_v46 = vsub.f32 1.5, %v691_v56  ;;  %vm697_vm10 = vcmp.eq.f32.partialorder %v2347_v60, 0.0 }
  0xe8   : > { %v1707_v0 = vpop.eup %1706  ;;  %v698_v1 = vand.u32 2147483648, %v2347_v60  ;;  %v999_v2 = vmul.f32 4.0, %v967_v8  ;;  %v1520_v12 = vand.u32 2147483647, %v1519_v62  ;;  %v2423_v40 = vadd.f32 1e-16, %v472_v54  ;;  %v520_v54 = vpop.f32.mrf.mxu2 }
  0xe9   : > { %v1107_v4 = vadd.f32 %v2161_v14, %v1072_v57  ;;  %v785_v6 = vmul.f32 %v1707_v0, %v2388_v22  ;;  %v693_v58 = vmul.f32 %v1705_v33, %v692_v46  ;;  %v1047_v5 = vmul.f32 0.25, %v1459_v61 }
  0xea   : > { %vm2425_vm11 = vcmp.lt.f32.partialorder %v1516_v55, 8388608.0  ;;  %v1582_v10 = vcvt.f32.s32 %v999_v2  ;;  %v1522_v59 = vor.u32 %v1521_v51, %v1520_v12  ;;  %v1580_v16 = vand.u32 2147483647, %v999_v2 }
  0xeb   : > { %v1709_v13 = vpop.eup %1708  ;;  %1139 = vst [vmem:[%s2202_s9 + $0x18] sm:$0xff] %v1107_v4  ;;  %v786_v44 = vmul.f32 %v1707_v0, %v785_v6  ;;  %1710 = vrsqrt.f32 %v2423_v40  ;;  %v694_v17 = vmul.f32 %v693_v58, %v2347_v60  ;;  %v1585_v26 = vand.u32 2147483648, %v999_v2 }
  0xec   : > { %v881_v20 = vmul.f32 %v1709_v13, %v2395_v38  ;;  %v1583_v23 = vcvt.s32.f32 %v1582_v10  ;;  %vm791_vm12 = vcmp.eq.f32.partialorder %v2388_v22, inf  ;;  %vm793_vm13 = vcmp.eq.f32.partialorder %v2388_v22, 0.0 }
  0xed   : > { %v787_v18 = vmul.f32 0.5, %v786_v44  ;;  %v794_v15 = vand.u32 2147483648, %v2388_v22  ;;  %v696_v24 = vsel %vm695_vm9, %v2347_v60, %v694_v17  ;;  %v1523_v25 = vsel %vm2425_vm11, %v1522_v59, %v2393_v35  ;;  %v544_v17 = vpop.f32.mrf.mxu3 }
  0xee   : > { %v882_v36 = vmul.f32 %v1709_v13, %v881_v20  ;;  %v1584_v27 = vand.u32 2147483647, %v1583_v23  ;;  %v699_v11 = vsel %vm697_vm10, %v698_v1, %v696_v24  ;;  %vm887_vm14 = vcmp.eq.f32.partialorder %v2395_v38, inf }
  0xef   : > { %v788_v28 = vsub.f32 1.5, %v787_v18  ;;  %vm2446_vm15 = vcmp.lt.f32.partialorder %v1580_v16, 8388608.0  ;;  %v976_v30 = vmul.f32 4.0, %v944_v63  ;;  %v1080_v31 = vmul.f32 %v1047_v5, %v699_v11 }
  0xf0   : > { %v883_v32 = vmul.f32 0.5, %v882_v36  ;;  %v1586_v37 = vor.u32 %v1585_v26, %v1584_v27  ;;  %v2450_v33 = vadd.f32 1e-16, %v496_v29  ;;  %v1055_v21 = vmul.f32 0.25, %v1523_v25  ;;  %v968_v26 = vld [vmem:[%s2000_s30 + $0xe0] sm:$0xff] }
  0xf1   : > { %v1711_v34 = vpop.eup %1710  ;;  %v789_v35 = vmul.f32 %v1707_v0, %v788_v28  ;;  %v1396_v60 = vand.u32 2147483647, %v976_v30  ;;  %v1398_v39 = vcvt.f32.s32 %v976_v30  ;;  %v1115_v41 = vadd.f32 %v2161_v14, %v1080_v31 }
  0xf2   : > { %v884_v42 = vsub.f32 1.5, %v883_v32  ;;  %v1587_v9 = vsel %vm2446_vm15, %v1586_v37, %v999_v2  ;;  %v605_v43 = vmul.f32 %v1711_v34, %v2423_v40  ;;  %v1401_v45 = vand.u32 2147483648, %v976_v30 }
  0xf3   : > { %v790_v49 = vmul.f32 %v789_v35, %v2388_v22  ;;  %v1399_v7 = vcvt.s32.f32 %v1398_v39  ;;  %v2458_v53 = vmul.f32 4.0, %v952_v52  ;;  %1147 = vst [vmem:[%s2202_s9 + $0x58] sm:$0xff] %v1115_v41  ;;  %vm889_vm0 = vcmp.eq.f32.partialorder %v2395_v38, 0.0  ;;  %v475_v39 = vpop.f32.mrf.mxu0 }
  0xf4   : > { %v885_v48 = vmul.f32 %v1709_v13, %v884_v42  ;;  %v606_v50 = vmul.f32 %v1711_v34, %v605_v43  ;;  %1712 = vrsqrt.f32 %v2450_v33  ;;  %v890_v47 = vand.u32 2147483648, %v2395_v38  ;;  %v960_v13 = vld [vmem:[%s2000_s30 + $0xa0] sm:$0xff] }
  0xf5   : > { %v792_v8 = vsel %vm791_vm12, %v2388_v22, %v790_v49  ;;  %v1063_v56 = vmul.f32 0.25, %v1587_v9  ;;  %v1400_v55 = vand.u32 2147483647, %v1399_v7  ;;  %vm2470_vm1 = vcmp.lt.f32.partialorder %v1396_v60, 8388608.0 }
  0xf6   : > { %v795_v57 = vsel %vm793_vm13, %v794_v15, %v792_v8  ;;  %v886_v61 = vmul.f32 %v885_v48, %v2395_v38  ;;  %v607_v62 = vmul.f32 0.5, %v606_v50  ;;  %v1460_v1 = vand.u32 2147483647, %v2458_v53  ;;  %v499_v48 = vpop.f32.mrf.mxu1 }
  0xf7   : > { %v1088_v0 = vmul.f32 %v1055_v21, %v795_v57  ;;  %v1402_v46 = vor.u32 %v1401_v45, %v1400_v55  ;;  %v1462_v2 = vcvt.f32.s32 %v2458_v53  ;;  %v1465_v6 = vand.u32 2147483648, %v2458_v53 }
  0xf8   : > { %v888_v22 = vsel %vm887_vm14, %v2395_v38, %v886_v61  ;;  %v608_v4 = vsub.f32 1.5, %v607_v62  ;;  %v2480_v12 = vadd.f32 1e-16, %v520_v54  ;;  %vm611_vm2 = vcmp.eq.f32.partialorder %v2423_v40, inf }
  0xf9   : > { %v1123_v58 = vadd.f32 %v2161_v14, %v1088_v0  ;;  %v891_v5 = vsel %vm889_vm0, %v890_v47, %v888_v22  ;;  %v1403_v19 = vsel %vm2470_vm1, %v1402_v46, %v976_v30  ;;  %v1463_v10 = vcvt.s32.f32 %v1462_v2 }
  0xfa   : > { %v1713_v44 = vpop.eup %1712  ;;  %v1096_v59 = vmul.f32 %v1063_v56, %v891_v5  ;;  %v609_v16 = vmul.f32 %v1711_v34, %v608_v4  ;;  %1714 = vrsqrt.f32 %v2480_v12  ;;  %v614_v20 = vand.u32 2147483648, %v2423_v40 }
  0xfb   : > { %1155 = vst [vmem:[%s2202_s9 + $0x98] sm:$0xff] %v1123_v58  ;;  %v701_v38 = vmul.f32 %v1713_v44, %v2450_v33  ;;  %v1464_v23 = vand.u32 2147483647, %v1463_v10  ;;  %v1040_v15 = vmul.f32 0.25, %v1403_v19  ;;  %v2496_v29 = vmul.f32 4.0, %v960_v13 }
  0xfc   : > { %v1131_v63 = vadd.f32 %v2161_v14, %v1096_v59  ;;  %v610_v18 = vmul.f32 %v609_v16, %v2423_v40  ;;  %vm2498_vm3 = vcmp.lt.f32.partialorder %v1460_v1, 8388608.0  ;;  %v2502_v27 = vadd.f32 1e-16, %v544_v17 }
  0xfd   : > { %v702_v24 = vmul.f32 %v1713_v44, %v701_v38  ;;  %v1466_v36 = vor.u32 %v1465_v6, %v1464_v23  ;;  %vm613_vm4 = vcmp.eq.f32.partialorder %v2423_v40, 0.0  ;;  %v1526_v28 = vcvt.f32.s32 %v2496_v29  ;;  %v953_v23 = vld [vmem:[%s2000_s30 + $0x68] sm:$0xff] }
  0xfe   : > { %1163 = vst [vmem:[%s2202_s9 + $0xd8] sm:$0xff] %v1131_v63  ;;  %v612_v11 = vsel %vm611_vm2, %v2423_v40, %v610_v18  ;;  %v2508_v3 = vmul.f32 4.0, %v968_v26  ;;  %v1524_v32 = vand.u32 2147483647, %v2496_v29  ;;  %1716 = vrsqrt.f32 %v2502_v27 }
  0xff   : > { %v615_v30 = vsel %vm613_vm4, %v614_v20, %v612_v11  ;;  %v703_v31 = vmul.f32 0.5, %v702_v24  ;;  %v1467_v34 = vsel %vm2498_vm3, %v1466_v36, %v2458_v53  ;;  %v1527_v35 = vcvt.s32.f32 %v1526_v28  ;;  %v945_v53 = vld [vmem:[%s2000_s30 + $0x28] sm:$0xff]  ;;  %v523_v11 = vpop.f32.mrf.mxu2 }
 0x100   : > { %v1715_v37 = vpop.eup %1714  ;;  %v1073_v52 = vmul.f32 %v1040_v15, %v615_v30  ;;  %v1529_v40 = vand.u32 2147483648, %v2496_v29  ;;  %vm707_vm5 = vcmp.eq.f32.partialorder %v2450_v33, inf  ;;  %vm709_vm6 = vcmp.eq.f32.partialorder %v2450_v33, 0.0 }
 0x101   : > { %v704_v21 = vsub.f32 1.5, %v703_v31  ;;  %v797_v60 = vmul.f32 %v1715_v37, %v2480_v12  ;;  %v710_v42 = vand.u32 2147483648, %v2450_v33  ;;  %v1528_v9 = vand.u32 2147483647, %v1527_v35  ;;  %v961_v35 = vld [vmem:[%s2000_s30 + $0xa8] sm:$0xff] }
 0x102   : > { %v1108_v41 = vadd.f32 %v2161_v14, %v1073_v52  ;;  %v1048_v49 = vmul.f32 0.25, %v1467_v34  ;;  %v1590_v45 = vcvt.f32.s32 %v2508_v3  ;;  %vm803_vm7 = vcmp.eq.f32.partialorder %v2480_v12, inf }
 0x103   : > { %v705_v43 = vmul.f32 %v1713_v44, %v704_v21  ;;  %v798_v7 = vmul.f32 %v1715_v37, %v797_v60  ;;  %vm2525_vm8 = vcmp.lt.f32.partialorder %v1524_v32, 8388608.0  ;;  %v1530_v8 = vor.u32 %v1529_v40, %v1528_v9 }
 0x104   : > { %1140 = vst [vmem:[%s2202_s9 + $0x20] sm:$0xff] %v1108_v41  ;;  %v1588_v47 = vand.u32 2147483647, %v2508_v3  ;;  %v2530_v56 = vadd.f32 1e-16, %v475_v39  ;;  %v1717_v55 = vpop.eup %1716  ;;  %v1591_v61 = vcvt.s32.f32 %v1590_v45  ;;  %v1593_v62 = vand.u32 2147483648, %v2508_v3 }
 0x105   : > { %v706_v54 = vmul.f32 %v705_v43, %v2450_v33  ;;  %v799_v57 = vmul.f32 0.5, %v798_v7  ;;  %v893_v51 = vmul.f32 %v1717_v55, %v2502_v27  ;;  %v2536_v0 = vmul.f32 4.0, %v945_v53 }
 0x106   : > { %1718 = vrsqrt.f32 %v2530_v56  ;;  %v2538_v46 = vadd.f32 1e-16, %v499_v48  ;;  %vm805_vm9 = vcmp.eq.f32.partialorder %v2480_v12, 0.0  ;;  %v1592_v22 = vand.u32 2147483647, %v1591_v61 }
 0x107   : > { %v708_v1 = vsel %vm707_vm5, %v2450_v33, %v706_v54  ;;  %v800_v2 = vsub.f32 1.5, %v799_v57  ;;  %v806_v6 = vand.u32 2147483648, %v2480_v12  ;;  %v1531_v58 = vsel %vm2525_vm8, %v1530_v8, %v2496_v29  ;;  %v547_v57 = vpop.f32.mrf.mxu3 }
 0x108   : > { %v711_v4 = vsel %vm709_vm6, %v710_v42, %v708_v1  ;;  %v894_v5 = vmul.f32 %v1717_v55, %v893_v51  ;;  %vm2550_vm10 = vcmp.lt.f32.partialorder %v1588_v47, 8388608.0  ;;  %v1594_v44 = vor.u32 %v1593_v62, %v1592_v22  ;;  %v969_v1 = vld [vmem:[%s2000_s30 + $0xe8] sm:$0xff] }
 0x109   : > { %v1081_v19 = vmul.f32 %v1048_v49, %v711_v4  ;;  %v801_v10 = vmul.f32 %v1715_v37, %v800_v2  ;;  %vm899_vm11 = vcmp.eq.f32.partialorder %v2502_v27, inf  ;;  %v1406_v33 = vcvt.f32.s32 %v2536_v0 }
 0x10a   : > { %v895_v59 = vmul.f32 0.5, %v894_v5  ;;  %1720 = vrsqrt.f32 %v2538_v46  ;;  %v1056_v20 = vmul.f32 0.25, %v1531_v58  ;;  %v1404_v38 = vand.u32 2147483647, %v2536_v0 }
 0x10b   : > { %v1116_v16 = vadd.f32 %v2161_v14, %v1081_v19  ;;  %v802_v17 = vmul.f32 %v801_v10, %v2480_v12  ;;  %v1595_v18 = vsel %vm2550_vm10, %v1594_v44, %v2508_v3  ;;  %v1407_v15 = vcvt.s32.f32 %v1406_v33 }
 0x10c   : > { %v1719_v26 = vpop.eup %1718  ;;  %v896_v63 = vsub.f32 1.5, %v895_v59  ;;  %v1409_v29 = vand.u32 2147483648, %v2536_v0  ;;  %vm901_vm12 = vcmp.eq.f32.partialorder %v2502_v27, 0.0  ;;  %v902_v25 = vand.u32 2147483648, %v2502_v27 }
 0x10d   : > { %1148 = vst [vmem:[%s2202_s9 + $0x60] sm:$0xff] %v1116_v16  ;;  %v804_v24 = vsel %vm803_vm7, %v2480_v12, %v802_v17  ;;  %v617_v36 = vmul.f32 %v1719_v26, %v2530_v56  ;;  %v1408_v30 = vand.u32 2147483647, %v1407_v15  ;;  %v985_v31 = vmul.f32 4.0, %v953_v23 }
 0x10e   : > { %v807_v28 = vsel %vm805_vm9, %v806_v6, %v804_v24  ;;  %v897_v3 = vmul.f32 %v1717_v55, %v896_v63  ;;  %v1064_v37 = vmul.f32 0.25, %v1595_v18  ;;  %vm2574_vm13 = vcmp.lt.f32.partialorder %v1404_v38, 8388608.0  ;;  %v478_v38 = vpop.f32.mrf.mxu0 }
 0x10f   : > { %v1089_v32 = vmul.f32 %v1056_v20, %v807_v28  ;;  %v618_v52 = vmul.f32 %v1719_v26, %v617_v36  ;;  %v1410_v60 = vor.u32 %v1409_v29, %v1408_v30  ;;  %v1470_v39 = vcvt.f32.s32 %v985_v31 }
 0x110   : > { %v1721_v40 = vpop.eup %1720  ;;  %v898_v21 = vmul.f32 %v897_v3, %v2502_v27  ;;  %v2580_v41 = vadd.f32 1e-16, %v523_v11  ;;  %v1468_v43 = vand.u32 2147483647, %v985_v31  ;;  %v1473_v45 = vand.u32 2147483648, %v985_v31 }
 0x111   : > { %v1124_v12 = vadd.f32 %v2161_v14, %v1089_v32  ;;  %v619_v42 = vmul.f32 0.5, %v618_v52  ;;  %v713_v9 = vmul.f32 %v1721_v40, %v2538_v46  ;;  %v1471_v7 = vcvt.s32.f32 %v1470_v39  ;;  %v946_v52 = vld [vmem:[%s2000_s30 + $0x30] sm:$0xff] }
 0x112   : > { %v900_v49 = vsel %vm899_vm11, %v2502_v27, %v898_v21  ;;  %v2587_v53 = vmul.f32 4.0, %v961_v35  ;;  %v1411_v8 = vsel %vm2574_vm13, %v1410_v60, %v2536_v0  ;;  %vm623_vm14 = vcmp.eq.f32.partialorder %v2530_v56, inf  ;;  %v502_v21 = vpop.f32.mrf.mxu1 }
 0x113   : > { %1156 = vst [vmem:[%s2202_s9 + $0xa0] sm:$0xff] %v1124_v12  ;;  %v903_v48 = vsel %vm901_vm12, %v902_v25, %v900_v49  ;;  %v620_v50 = vsub.f32 1.5, %v619_v42  ;;  %v714_v47 = vmul.f32 %v1721_v40, %v713_v9  ;;  %v1472_v54 = vand.u32 2147483647, %v1471_v7  ;;  %v2633_v25 = vld [vmem:[%s2910_s2] ss:$0 sm:$0xff] }
 0x114   : > { %v1097_v55 = vmul.f32 %v1064_v37, %v903_v48  ;;  %1722 = vrsqrt.f32 %v2580_v41  ;;  %v626_v62 = vand.u32 2147483648, %v2530_v56  ;;  %vm2598_vm15 = vcmp.lt.f32.partialorder %v1468_v43, 8388608.0  ;;  %v954_v12 = vld [vmem:[%s2000_s30 + $0x70] sm:$0xff] }
 0x115   : > { %v621_v61 = vmul.f32 %v1719_v26, %v620_v50  ;;  %v715_v51 = vmul.f32 0.5, %v714_v47  ;;  %v1041_v2 = vmul.f32 0.25, %v1411_v8  ;;  %v1474_v22 = vor.u32 %v1473_v45, %v1472_v54 }
 0x116   : > { %v1132_v0 = vadd.f32 %v2161_v14, %v1097_v55  ;;  %v1534_v4 = vcvt.f32.s32 %v2587_v53  ;;  %v1532_v5 = vand.u32 2147483647, %v2587_v53  ;;  %v2607_v19 = vadd.f32 1e-16, %v547_v57 }
 0x117   : > { %v622_v6 = vmul.f32 %v621_v61, %v2530_v56  ;;  %v716_v58 = vsub.f32 1.5, %v715_v51  ;;  %v1475_v10 = vsel %vm2598_vm15, %v1474_v22, %v985_v31  ;;  %v1537_v44 = vand.u32 2147483648, %v2587_v53 }
 0x118   : > { %1164 = vst [vmem:[%s2202_s9 + $0xe0] sm:$0xff] %v1132_v0  ;;  %v1535_v13 = vcvt.s32.f32 %v1534_v4  ;;  %v2613_v59 = vmul.f32 4.0, %v969_v1  ;;  %vm625_vm0 = vcmp.eq.f32.partialorder %v2530_v56, 0.0  ;;  %1724 = vrsqrt.f32 %v2607_v19 }
 0x119   : > { %v624_v14 = vsel %vm623_vm14, %v2530_v56, %v622_v6  ;;  %v717_v33 = vmul.f32 %v1721_v40, %v716_v58  ;;  %vm719_vm1 = vcmp.eq.f32.partialorder %v2538_v46, inf  ;;  %vm721_vm2 = vcmp.eq.f32.partialorder %v2538_v46, 0.0 }
 0x11a   : > { %v1723_v16 = vpop.eup %1722  ;;  %v627_v17 = vsel %vm625_vm0, %v626_v62, %v624_v14  ;;  %v1536_v20 = vand.u32 2147483647, %v1535_v13  ;;  %v1049_v63 = vmul.f32 0.25, %v1475_v10  ;;  %v722_v56 = vand.u32 2147483648, %v2538_v46  ;;  %v526_v10 = vpop.f32.mrf.mxu2 }
 0x11b   : > { %v1074_v23 = vmul.f32 %v1041_v2, %v627_v17  ;;  %v718_v26 = vmul.f32 %v717_v33, %v2538_v46  ;;  %v809_v18 = vmul.f32 %v1723_v16, %v2580_v41  ;;  %vm2625_vm3 = vcmp.lt.f32.partialorder %v1532_v5, 8388608.0  ;;  %v962_v33 = vld [vmem:[%s2000_s30 + $0xb0] sm:$0xff] }
 0x11c   : > { %v1538_v29 = vor.u32 %v1537_v44, %v1536_v20  ;;  %v1598_v24 = vcvt.f32.s32 %v2613_v59  ;;  %v2637_v3 = vadd.f32 1e-16, %v478_v38  ;;  %v1596_v31 = vand.u32 2147483647, %v2613_v59 }
 0x11d   : > { %v1109_v36 = vadd.f32 %v2633_v25, %v1074_v23  ;;  %v720_v11 = vsel %vm719_vm1, %v2538_v46, %v718_v26  ;;  %v810_v28 = vmul.f32 %v1723_v16, %v809_v18  ;;  %v1601_v37 = vand.u32 2147483648, %v2613_v59 }
 0x11e   : > { %v723_v30 = vsel %vm721_vm2, %v722_v56, %v720_v11  ;;  %v1599_v32 = vcvt.s32.f32 %v1598_v24  ;;  %v1725_v34 = vpop.eup %1724  ;;  %vm815_vm4 = vcmp.eq.f32.partialorder %v2580_v41, inf  ;;  %1726 = vrsqrt.f32 %v2637_v3 }
 0x11f   : > { %1141 = vst [vmem:[%s2202_s9 + $0x28] sm:$0xff] %v1109_v36  ;;  %v1082_v35 = vmul.f32 %v1049_v63, %v723_v30  ;;  %v811_v40 = vmul.f32 0.5, %v810_v28  ;;  %vm817_vm5 = vcmp.eq.f32.partialorder %v2580_v41, 0.0  ;;  %v818_v46 = vand.u32 2147483648, %v2580_v41 }
 0x120   : > { %v905_v60 = vmul.f32 %v1725_v34, %v2607_v19  ;;  %v1600_v39 = vand.u32 2147483647, %v1599_v32  ;;  %v1539_v43 = vsel %vm2625_vm3, %v1538_v29, %v2587_v53  ;;  %v978_v49 = vmul.f32 4.0, %v946_v52 }
 0x121   : > { %v1117_v42 = vadd.f32 %v2633_v25, %v1082_v35  ;;  %v812_v9 = vsub.f32 1.5, %v811_v40  ;;  %vm2655_vm6 = vcmp.lt.f32.partialorder %v1596_v31, 8388608.0  ;;  %v2659_v50 = vadd.f32 1e-16, %v502_v21  ;;  %v550_v35 = vpop.f32.mrf.mxu3 }
 0x122   : > { %v906_v7 = vmul.f32 %v1725_v34, %v905_v60  ;;  %v1602_v48 = vor.u32 %v1601_v37, %v1600_v39  ;;  %v1412_v47 = vand.u32 2147483647, %v978_v49  ;;  %v1414_v55 = vcvt.f32.s32 %v978_v49  ;;  %v970_v60 = vld [vmem:[%s2000_s30 + $0xf0] sm:$0xff]  ;;  %v481_v39 = vpop.f32.mrf.mxu0 }
 0x123   : > { %1149 = vst [vmem:[%s2202_s9 + $0x68] sm:$0xff] %v1117_v42  ;;  %v813_v8 = vmul.f32 %v1723_v16, %v812_v9  ;;  %v2662_v54 = vmul.f32 4.0, %v954_v12  ;;  %vm911_vm7 = vcmp.eq.f32.partialorder %v2607_v19, inf  ;;  %vm913_vm8 = vcmp.eq.f32.partialorder %v2607_v19, 0.0 }
 0x124   : > { %v907_v57 = vmul.f32 0.5, %v906_v7  ;;  %1728 = vrsqrt.f32 %v2659_v50  ;;  %v1727_v53 = vpop.eup %1726  ;;  %v1057_v62 = vmul.f32 0.25, %v1539_v43  ;;  %v1415_v51 = vcvt.s32.f32 %v1414_v55 }
 0x125   : > { %v814_v61 = vmul.f32 %v813_v8, %v2580_v41  ;;  %v1417_v27 = vand.u32 2147483648, %v978_v49  ;;  %v914_v0 = vand.u32 2147483648, %v2607_v19  ;;  %v1603_v2 = vsel %vm2655_vm6, %v1602_v48, %v2613_v59 }
 0x126   : > { %v908_v1 = vsub.f32 1.5, %v907_v57  ;;  %v629_v22 = vmul.f32 %v1727_v53, %v2637_v3  ;;  %vm2676_vm9 = vcmp.lt.f32.partialorder %v1412_v47, 8388608.0  ;;  %v1416_v58 = vand.u32 2147483647, %v1415_v51  ;;  %v947_v51 = vld [vmem:[%s2000_s30 + $0x38] sm:$0xff] }
 0x127   : > { %v816_v4 = vsel %vm815_vm4, %v2580_v41, %v814_v61  ;;  %v1478_v5 = vcvt.f32.s32 %v2662_v54  ;;  %v1476_v59 = vand.u32 2147483647, %v2662_v54  ;;  %v1481_v38 = vand.u32 2147483648, %v2662_v54 }
 0x128   : > { %v819_v13 = vsel %vm817_vm5, %v818_v46, %v816_v4  ;;  %v909_v44 = vmul.f32 %v1725_v34, %v908_v1  ;;  %v630_v14 = vmul.f32 %v1727_v53, %v629_v22  ;;  %v1418_v17 = vor.u32 %v1417_v27, %v1416_v58 }
 0x129   : > { %v1090_v16 = vmul.f32 %v1057_v62, %v819_v13  ;;  %v1479_v20 = vcvt.s32.f32 %v1478_v5  ;;  %v1065_v63 = vmul.f32 0.25, %v1603_v2  ;;  %v2687_v56 = vadd.f32 1e-16, %v526_v10 }
 0x12a   : > { %v1729_v23 = vpop.eup %1728  ;;  %v910_v26 = vmul.f32 %v909_v44, %v2607_v19  ;;  %v631_v18 = vmul.f32 0.5, %v630_v14  ;;  %v2691_v24 = vmul.f32 4.0, %v962_v33  ;;  %v1419_v28 = vsel %vm2676_vm9, %v1418_v17, %v978_v49 }
 0x12b   : > { %v1125_v41 = vadd.f32 %v2633_v25, %v1090_v16  ;;  %v725_v15 = vmul.f32 %v1729_v23, %v2659_v50  ;;  %v1480_v29 = vand.u32 2147483647, %v1479_v20  ;;  %1730 = vrsqrt.f32 %v2687_v56 }
 0x12c   : > { %v912_v36 = vsel %vm911_vm7, %v2607_v19, %v910_v26  ;;  %v632_v11 = vsub.f32 1.5, %v631_v18  ;;  %vm2702_vm10 = vcmp.lt.f32.partialorder %v1476_v59, 8388608.0  ;;  %vm635_vm11 = vcmp.eq.f32.partialorder %v2637_v3, inf }
 0x12d   : > { %1157 = vst [vmem:[%s2202_s9 + $0xa8] sm:$0xff] %v1125_v41  ;;  %v915_v30 = vsel %vm913_vm8, %v914_v0, %v912_v36  ;;  %v726_v31 = vmul.f32 %v1729_v23, %v725_v15  ;;  %v1482_v37 = vor.u32 %v1481_v38, %v1480_v29  ;;  %vm637_vm12 = vcmp.eq.f32.partialorder %v2637_v3, 0.0  ;;  %v505_v38 = vpop.f32.mrf.mxu1 }
 0x12e   : > { %v1098_v52 = vmul.f32 %v1065_v63, %v915_v30  ;;  %v633_v34 = vmul.f32 %v1727_v53, %v632_v11  ;;  %v638_v40 = vand.u32 2147483648, %v2637_v3  ;;  %v1042_v21 = vmul.f32 0.25, %v1419_v28 }
 0x12f   : > { %v727_v46 = vmul.f32 0.5, %v726_v31  ;;  %v1542_v19 = vcvt.f32.s32 %v2691_v24  ;;  %v1483_v9 = vsel %vm2702_vm10, %v1482_v37, %v2662_v54  ;;  %v1540_v43 = vand.u32 2147483647, %v2691_v24 }
 0x130   : > { %v1133_v12 = vadd.f32 %v2633_v25, %v1098_v52  ;;  %v634_v42 = vmul.f32 %v633_v34, %v2637_v3  ;;  %v1545_v45 = vand.u32 2147483648, %v2691_v24  ;;  %v2718_v48 = vadd.f32 1e-16, %v550_v35  ;;  %v529_v35 = vpop.f32.mrf.mxu2 }
 0x131   : > { %v728_v49 = vsub.f32 1.5, %v727_v46  ;;  %v1543_v7 = vcvt.s32.f32 %v1542_v19  ;;  %v1731_v8 = vpop.eup %1730  ;;  %vm731_vm13 = vcmp.eq.f32.partialorder %v2659_v50, inf  ;;  %v2725_v55 = vmul.f32 4.0, %v970_v60 }
 0x132   : > { %1165 = vst [vmem:[%s2202_s9 + $0xe8] sm:$0xff] %v1133_v12  ;;  %v636_v47 = vsel %vm635_vm11, %v2637_v3, %v634_v42  ;;  %v2727_v54 = vadd.f32 1e-16, %v481_v39  ;;  %v821_v61 = vmul.f32 %v1731_v8, %v2687_v56  ;;  %vm733_vm14 = vcmp.eq.f32.partialorder %v2659_v50, 0.0 }
 0x133   : > { %v639_v57 = vsel %vm637_vm12, %v638_v40, %v636_v47  ;;  %v729_v53 = vmul.f32 %v1729_v23, %v728_v49  ;;  %v1544_v62 = vand.u32 2147483647, %v1543_v7  ;;  %v1050_v1 = vmul.f32 0.25, %v1483_v9 }
 0x134   : > { %v1075_v27 = vmul.f32 %v1042_v21, %v639_v57  ;;  %1732 = vrsqrt.f32 %v2718_v48  ;;  %v822_v2 = vmul.f32 %v1731_v8, %v821_v61  ;;  %vm2736_vm15 = vcmp.lt.f32.partialorder %v1540_v43, 8388608.0  ;;  %v963_v61 = vld [vmem:[%s2000_s30 + $0xb8] sm:$0xff] }
 0x135   : > { %v730_v0 = vmul.f32 %v729_v53, %v2659_v50  ;;  %v1546_v3 = vor.u32 %v1545_v45, %v1544_v62  ;;  %v734_v6 = vand.u32 2147483648, %v2659_v50  ;;  %v1606_v58 = vcvt.f32.s32 %v2725_v55  ;;  %v553_v62 = vpop.f32.mrf.mxu3 }
 0x136   : > { %v1110_v4 = vadd.f32 %v2633_v25, %v1075_v27  ;;  %v2743_v5 = vmul.f32 4.0, %v947_v51  ;;  %v823_v13 = vmul.f32 0.5, %v822_v2  ;;  %v1604_v44 = vand.u32 2147483647, %v2725_v55 }
 0x137   : > { %v732_v10 = vsel %vm731_vm13, %v2659_v50, %v730_v0  ;;  %1734 = vrsqrt.f32 %v2727_v54  ;;  %v1547_v59 = vsel %vm2736_vm15, %v1546_v3, %v2691_v24  ;;  %v1607_v33 = vcvt.s32.f32 %v1606_v58  ;;  %v955_v24 = vld [vmem:[%s2000_s30 + $0x78] sm:$0xff] }
 0x138   : > { %1142 = vst [vmem:[%s2202_s9 + $0x30] sm:$0xff] %v1110_v4  ;;  %v735_v14 = vsel %vm733_vm14, %v734_v6, %v732_v10  ;;  %v1609_v16 = vand.u32 2147483648, %v2725_v55  ;;  %v824_v20 = vsub.f32 1.5, %v823_v13  ;;  %vm827_vm0 = vcmp.eq.f32.partialorder %v2687_v56, inf }
 0x139   : > { %v1083_v17 = vmul.f32 %v1050_v1, %v735_v14  ;;  %v830_v26 = vand.u32 2147483648, %v2687_v56  ;;  %v1608_v63 = vand.u32 2147483647, %v1607_v33  ;;  %v1422_v50 = vcvt.f32.s32 %v2743_v5  ;;  %v971_v33 = vld [vmem:[%s2000_s30 + $0xf8] sm:$0xff] }
 0x13a   : > { %v1733_v23 = vpop.eup %1732  ;;  %v825_v41 = vmul.f32 %v1731_v8, %v824_v20  ;;  %v1058_v15 = vmul.f32 0.25, %v1547_v59  ;;  %vm2763_vm1 = vcmp.lt.f32.partialorder %v1604_v44, 8388608.0  ;;  %v2767_v30 = vadd.f32 1e-16, %v505_v38 }
 0x13b   : > { %v1118_v18 = vadd.f32 %v2633_v25, %v1083_v17  ;;  %v917_v29 = vmul.f32 %v1733_v23, %v2718_v48  ;;  %v1610_v11 = vor.u32 %v1609_v16, %v1608_v63  ;;  %v1423_v28 = vcvt.s32.f32 %v1422_v50 }
 0x13c   : > { %v826_v32 = vmul.f32 %v825_v41, %v2687_v56  ;;  %v1420_v52 = vand.u32 2147483647, %v2743_v5  ;;  %v1425_v34 = vand.u32 2147483648, %v2743_v5  ;;  %1736 = vrsqrt.f32 %v2767_v30 }
 0x13d   : > { %v1735_v31 = vpop.eup %1734  ;;  %1150 = vst [vmem:[%s2202_s9 + $0x70] sm:$0xff] %v1118_v18  ;;  %v918_v37 = vmul.f32 %v1733_v23, %v917_v29  ;;  %v1424_v21 = vand.u32 2147483647, %v1423_v28  ;;  %v2775_v46 = vmul.f32 4.0, %v955_v24  ;;  %vm829_vm2 = vcmp.eq.f32.partialorder %v2687_v56, 0.0 }
 0x13e   : > { %v641_v40 = vmul.f32 %v1735_v31, %v2727_v54  ;;  %v828_v19 = vsel %vm827_vm0, %v2687_v56, %v826_v32  ;;  %vm923_vm3 = vcmp.eq.f32.partialorder %v2718_v48, inf  ;;  %v1611_v12 = vsel %vm2763_vm1, %v1610_v11, %v2725_v55 }
 0x13f   : > { %v919_v60 = vmul.f32 0.5, %v918_v37  ;;  %v831_v39 = vsel %vm829_vm2, %v830_v26, %v828_v19  ;;  %v2785_v9 = vadd.f32 1e-16, %v529_v35  ;;  %vm925_vm4 = vcmp.eq.f32.partialorder %v2718_v48, 0.0 }
 0x140   : > { %v642_v42 = vmul.f32 %v1735_v31, %v641_v40  ;;  %v1091_v43 = vmul.f32 %v1058_v15, %v831_v39  ;;  %v1426_v7 = vor.u32 %v1425_v34, %v1424_v21  ;;  %v926_v56 = vand.u32 2147483648, %v2718_v48 }
 0x141   : > { %v920_v49 = vsub.f32 1.5, %v919_v60  ;;  %vm2789_vm5 = vcmp.lt.f32.partialorder %v1420_v52, 8388608.0  ;;  %v1486_v47 = vcvt.f32.s32 %v2775_v46  ;;  %v1066_v53 = vmul.f32 0.25, %v1611_v12 }
 0x142   : > { %v643_v45 = vmul.f32 0.5, %v642_v42  ;;  %v1126_v55 = vadd.f32 %v2633_v25, %v1091_v43  ;;  %vm647_vm6 = vcmp.eq.f32.partialorder %v2727_v54, inf  ;;  %v1737_v51 = vpop.eup %1736  ;;  %v1489_v0 = vand.u32 2147483648, %v2775_v46 }
 0x143   : > { %v921_v57 = vmul.f32 %v1733_v23, %v920_v49  ;;  %v1487_v1 = vcvt.s32.f32 %v1486_v47  ;;  %1738 = vrsqrt.f32 %v2785_v9  ;;  %v1427_v22 = vsel %vm2789_vm5, %v1426_v7, %v2743_v5 }
 0x144   : > { %v644_v27 = vsub.f32 1.5, %v643_v45  ;;  %1158 = vst [vmem:[%s2202_s9 + $0xb0] sm:$0xff] %v1126_v55  ;;  %v737_v3 = vmul.f32 %v1737_v51, %v2767_v30  ;;  %v1484_v4 = vand.u32 2147483647, %v2775_v46  ;;  %v995_v10 = vmul.f32 4.0, %v963_v61 }
 0x145   : > { %v922_v2 = vmul.f32 %v921_v57, %v2718_v48  ;;  %v1488_v58 = vand.u32 2147483647, %v1487_v1  ;;  %v2806_v13 = vadd.f32 1e-16, %v553_v62  ;;  %vm649_vm7 = vcmp.eq.f32.partialorder %v2727_v54, 0.0 }
 0x146   : > { %v645_v6 = vmul.f32 %v1735_v31, %v644_v27  ;;  %v650_v14 = vand.u32 2147483648, %v2727_v54  ;;  %v738_v59 = vmul.f32 %v1737_v51, %v737_v3  ;;  %v1043_v17 = vmul.f32 0.25, %v1427_v22 }
 0x147   : > { %v924_v44 = vsel %vm923_vm3, %v2718_v48, %v922_v2  ;;  %v1490_v20 = vor.u32 %v1489_v0, %v1488_v58  ;;  %vm2817_vm8 = vcmp.lt.f32.partialorder %v1484_v4, 8388608.0  ;;  %v1550_v63 = vcvt.f32.s32 %v995_v10 }
 0x148   : > { %v927_v5 = vsel %vm925_vm4, %v926_v56, %v924_v44  ;;  %v646_v16 = vmul.f32 %v645_v6, %v2727_v54  ;;  %v739_v23 = vmul.f32 0.5, %v738_v59  ;;  %v1548_v41 = vand.u32 2147483647, %v995_v10 }
 0x149   : > { %v1099_v38 = vmul.f32 %v1066_v53, %v927_v5  ;;  %v1739_v50 = vpop.eup %1738  ;;  %1740 = vrsqrt.f32 %v2806_v13  ;;  %v1003_v48 = vmul.f32 4.0, %v971_v33  ;;  %v1553_v36 = vand.u32 2147483648, %v995_v10 }
 0x14a   : > { %v648_v18 = vsel %vm647_vm6, %v2727_v54, %v646_v16  ;;  %v740_v24 = vsub.f32 1.5, %v739_v23  ;;  %v1491_v28 = vsel %vm2817_vm8, %v1490_v20, %v2775_v46  ;;  %v833_v31 = vmul.f32 %v1739_v50, %v2785_v9 }
 0x14b   : > { %v1134_v15 = vadd.f32 %v2633_v25, %v1099_v38  ;;  %v651_v29 = vsel %vm649_vm7, %v650_v14, %v648_v18  ;;  %v1551_v32 = vcvt.s32.f32 %v1550_v63  ;;  %vm743_vm9 = vcmp.eq.f32.partialorder %v2767_v30, inf }
 0x14c   : > { %v1076_v11 = vmul.f32 %v1043_v17, %v651_v29  ;;  %v741_v37 = vmul.f32 %v1737_v51, %v740_v24  ;;  %v834_v34 = vmul.f32 %v1739_v50, %v833_v31  ;;  %v1614_v35 = vcvt.f32.s32 %v1003_v48 }
 0x14d   : > { %1166 = vst [vmem:[%s2202_s9 + $0xf0] sm:$0xff] %v1134_v15  ;;  %v1552_v54 = vand.u32 2147483647, %v1551_v32  ;;  %v746_v21 = vand.u32 2147483648, %v2767_v30  ;;  %v1051_v19 = vmul.f32 0.25, %v1491_v28  ;;  %vm2837_vm10 = vcmp.lt.f32.partialorder %v1548_v41, 8388608.0 }
 0x14e   : > { %v1111_v52 = vadd.f32 %v2633_v25, %v1076_v11  ;;  %v742_v40 = vmul.f32 %v741_v37, %v2767_v30  ;;  %v835_v39 = vmul.f32 0.5, %v834_v34  ;;  %v1615_v42 = vcvt.s32.f32 %v1614_v35 }
 0x14f   : > { %v1741_v46 = vpop.eup %1740  ;;  %v1554_v12 = vor.u32 %v1553_v36, %v1552_v54  ;;  %v1617_v43 = vand.u32 2147483648, %v1003_v48  ;;  %vm745_vm11 = vcmp.eq.f32.partialorder %v2767_v30, 0.0  ;;  %v1612_v56 = vand.u32 2147483647, %v1003_v48 }
 0x150   : > { %1143 = vst [vmem:[%s2202_s9 + $0x38] sm:$0xff] %v1111_v52  ;;  %v744_v49 = vsel %vm743_vm9, %v2767_v30, %v742_v40  ;;  %v929_v7 = vmul.f32 %v1741_v46, %v2806_v13  ;;  %v836_v8 = vsub.f32 1.5, %v835_v39  ;;  %v1616_v47 = vand.u32 2147483647, %v1615_v42 }
 0x151   : > { %v747_v45 = vsel %vm745_vm11, %v746_v21, %v744_v49  ;;  %v1555_v57 = vsel %vm2837_vm10, %v1554_v12, %v995_v10  ;;  %vm2848_vm12 = vcmp.lt.f32.partialorder %v1612_v56, 8388608.0  ;;  %vm839_vm13 = vcmp.eq.f32.partialorder %v2785_v9, inf }
 0x152   : > { %v1084_v55 = vmul.f32 %v1051_v19, %v747_v45  ;;  %v930_v53 = vmul.f32 %v1741_v46, %v929_v7  ;;  %v837_v61 = vmul.f32 %v1739_v50, %v836_v8  ;;  %v1618_v62 = vor.u32 %v1617_v43, %v1616_v47 }
 0x153   : > { %v1059_v0 = vmul.f32 0.25, %v1555_v57  ;;  %v842_v2 = vand.u32 2147483648, %v2785_v9  ;;  %vm841_vm14 = vcmp.eq.f32.partialorder %v2785_v9, 0.0  ;;  %vm935_vm15 = vcmp.eq.f32.partialorder %v2806_v13, inf }
 0x154   : > { %v1119_v51 = vadd.f32 %v2633_v25, %v1084_v55  ;;  %v931_v27 = vmul.f32 0.5, %v930_v53  ;;  %v838_v1 = vmul.f32 %v837_v61, %v2785_v9  ;;  %v1619_v4 = vsel %vm2848_vm12, %v1618_v62, %v1003_v48 }
 0x155   : > { %v1067_v14 = vmul.f32 0.25, %v1619_v4  ;;  %vm937_vm0 = vcmp.eq.f32.partialorder %v2806_v13, 0.0 }
 0x156   : > { %1151 = vst [vmem:[%s2202_s9 + $0x78] sm:$0xff] %v1119_v51  ;;  %v932_v22 = vsub.f32 1.5, %v931_v27  ;;  %v840_v3 = vsel %vm839_vm13, %v2785_v9, %v838_v1  ;;  %v938_v9 = vand.u32 2147483648, %v2806_v13 }
 0x157   : > { %v843_v6 = vsel %vm841_vm14, %v842_v2, %v840_v3 }
 0x158   : > { %v933_v58 = vmul.f32 %v1741_v46, %v932_v22  ;;  %v1092_v10 = vmul.f32 %v1059_v0, %v843_v6 }
 0x15a   : > { %v934_v44 = vmul.f32 %v933_v58, %v2806_v13  ;;  %v1127_v59 = vadd.f32 %v2633_v25, %v1092_v10 }
 0x15c   : > { %v936_v33 = vsel %vm935_vm15, %v2806_v13, %v934_v44  ;;  %1159 = vst [vmem:[%s2202_s9 + $0xb8] sm:$0xff] %v1127_v59 }
 0x15d   : > { %v939_v5 = vsel %vm937_vm0, %v938_v9, %v936_v33 }
 0x15e   : > { %v1100_v16 = vmul.f32 %v1067_v14, %v939_v5 }
 0x160   : > { %v1135_v17 = vadd.f32 %v2633_v25, %v1100_v16 }
 0x162   : > { %1167 = vst [vmem:[%s2202_s9 + $0xf8] sm:$0xff] %v1135_v17 }
 0x163   : > { %1770 = shalt.err (!%p1767_p5)
}
 0x164   : > { %s1823_s5 = smov 128   ;;  %s1824_s9 = smov 8  }
 0x165   : > { %1620 = dma.vmem_to_hbm [thread:$0]  (%p1890_p4), %s1183_s18, 4096, %s1185_s22, %s1169_s24, %s1823_s5, %s1823_s5, %s1824_s9  }
 0x166 PF: > { %p1626_p6 = scmp.ge.s32.totalorder %s1821_s20, 2  ;;  %s1199_s11 = sand.u32 1, %s1801_s15  }
 0x167   : > { %s1200_s12 = scalar_lea.sflag [#allocation3], %s1199_s11 }
 0x168   : > { %p1623_p7 = pnand %p1626_p6, %p1897_p8 }
 0x16a   : > { %p1624_p9 = pneg %p1623_p7 }
 0x16c   : > { %1796 = dma.done.wait (%p1624_p9), %s1200_s12, 4096  }
 0x16d   : > { %1798 = vsyncadd (%p1624_p9), %s1200_s12, 4294963200  ;;  %s17_s20 = sadd.s32 1, %s1821_s20   ;;  %s2977_s15 = smov %s1805_s16 }
 0x16e   : > { %p14_p10 = scmp.ge.s32.totalorder %s17_s20, 4   ;;  %s2978_s16 = smov %s1809_s17 }
 0x16f   : > { %s2979_s17 = smov %s1903_s28  ;;  %s2980_s18 = smov %s1817_s19 }
 0x170   : > { %s2981_s19 = smov %s2983_s23  ;;  %16 = sbr.rel (!%p14_p10) target bundleno = 4 (0x4), region = 80 }
 0x175   :  { %1206 = vsyncpa [#allocation3], 1 }
 0x176   :  { %1208 = vsyncpa [#allocation3 + $0x1], 1 }

</bundles_post_ra>
